<compile_context>
chip_gen: v7x
topology: tpu7x:2x2x1
jax: 0.10.0
libtpu: 0.0.40
codegen_flags: <defaults>
</compile_context>

<pallas_src>
from functools import partial

import jax
import jax.numpy as jnp
from jax import lax
from jax.experimental import pallas as pl
from jax.experimental.pallas import tpu as pltpu

HPARAMS = dict(CATEGORICAL_DIM=8, HIDDEN_DIM=32, RNN_LAYERS=2, IN_DIM=16, SEQ_LEN=8)

GATE_LANES = 128  # each GRU gate gets its own 128-lane slot -> vreg-aligned slices


# ----------------------------------------------------------------------------- kernel
def _rnn_decoder_kernel(x_ref,    # (B, H)           latent, padded C -> H lanes
                        w_ref,    # (2L+1, H, 3*GL)  [W_ih^T_0, W_hh^T_0, ..., fcW^T]
                        b_ref,    # (2L+1, 3*GL)     [b_x_0, b_hn_0, ..., fc_b]
                        out_ref,  # (B, T*D)         lane-dense output
                        *, T, L, H, D, GL):
    f32 = jnp.float32
    B = x_ref.shape[0]

    def mm(a, b):
        return jnp.dot(a, b, preferred_element_type=f32)

    def run_layer(inp, w_ih, w_hh, b_x, b_hn, shared_input):
        # Fused input-gate matmul for the whole layer (hoisted off the recurrence).
        xg = mm(inp, w_ih) + b_x                       # (rows, 3*GL), biases folded
        xr_a = xg[:, 0:H]                              # gate slices at vreg boundaries
        xz_a = xg[:, GL:GL + H]
        xn_a = xg[:, 2 * GL:2 * GL + H]

        h = jnp.zeros((B, H), f32)
        hs = []
        for t in range(T):                             # fully unrolled (T static)
            if shared_input:                           # layer 0: same latent every step
                xr, xz, xn = xr_a, xz_a, xn_a
            else:
                lo = t * B                             # multiples of 8 -> sublane aligned
                xr = xr_a[lo:lo + B]
                xz = xz_a[lo:lo + B]
                xn = xn_a[lo:lo + B]
            # ONE fused hidden-gate matmul per step (the serial critical path).
            hg = mm(h, w_hh)                           # (B, 3*GL)
            r = jax.nn.sigmoid(xr + hg[:, 0:H])
            z = jax.nn.sigmoid(xz + hg[:, GL:GL + H])
            n = jnp.tanh(xn + r * (hg[:, 2 * GL:2 * GL + H] + b_hn))
            h = (1.0 - z) * n + z * h
            hs.append(h)
        return jnp.concatenate(hs, axis=0)             # (T*B, H), sublane-aligned

    # ---- layer 0 (input repeats along time -> input gates computed once)
    seq = run_layer(x_ref[...],
                    w_ref[0], w_ref[1],
                    b_ref[0:1, :], b_ref[1:2, 0:H],
                    shared_input=True)

    # ---- layers 1 .. L-1
    for l in range(1, L):
        seq = run_layer(seq,
                        w_ref[2 * l], w_ref[2 * l + 1],
                        b_ref[2 * l:2 * l + 1, :], b_ref[2 * l + 1:2 * l + 2, 0:H],
                        shared_input=False)

    # ---- fc head over all timesteps at once
    y = mm(seq, w_ref[2 * L][:, 0:D]) + b_ref[2 * L:2 * L + 1, 0:D]   # (T*B, D)

    # ---- lane-dense (B, T*D) = (8, 128) output: 8 sublane slices concatenated
    #      along lanes -> one unmasked full-vreg store, reshape in wrapper is free.
    out_ref[...] = jnp.concatenate([y[t * B:(t + 1) * B, :] for t in range(T)], axis=1)


# ----------------------------------------------------------------------------- one-time param packing
def pack_params(params, hp=HPARAMS):
    """One-time prep: gate-split, transpose, pad to 128-lane gate slots, fold biases.

    Returns two contiguous f32 slabs consumed by the kernel:
      w: (2L+1, H, 3*GATE_LANES)   rows 2l = W_ih^T_l, 2l+1 = W_hh^T_l, last = fcW^T
      b: (2L+1, 3*GATE_LANES)      rows 2l = [b_ir+b_hr | b_iz+b_hz | b_in],
                                   rows 2l+1 = b_hn (lanes 0:H), last = fc bias
    """
    C, H, L, D = hp['CATEGORICAL_DIM'], hp['HIDDEN_DIM'], hp['RNN_LAYERS'], hp['IN_DIM']
    GL = GATE_LANES
    assert H <= GL and D <= GL and C <= H
    f32 = jnp.float32

    def pack_w(w):                       # w: (3H, in_dim) PyTorch layout, gate order [r,z,n]
        w = w.astype(f32)
        in_dim = w.shape[1]
        slots = []
        for g in range(3):
            wg = w[g * H:(g + 1) * H, :].T                         # (in_dim, H)
            slots.append(jnp.pad(wg, ((0, H - in_dim), (0, GL - H))))
        return jnp.concatenate(slots, axis=1)                      # (H, 3*GL)

    def pack_b(bih, bhh):
        bih, bhh = bih.astype(f32), bhh.astype(f32)
        b_x = jnp.concatenate([
            jnp.pad(bih[0:H] + bhh[0:H], (0, GL - H)),             # r: b_ir + b_hr
            jnp.pad(bih[H:2 * H] + bhh[H:2 * H], (0, GL - H)),     # z: b_iz + b_hz
            jnp.pad(bih[2 * H:3 * H], (0, GL - H)),                # n: b_in only
        ])
        b_hn = jnp.pad(bhh[2 * H:3 * H], (0, 3 * GL - H))          # stays inside r*(.)
        return b_x, b_hn

    w_rows, b_rows = [], []
    for l in range(L):
        w_rows.append(pack_w(params['wih'][l]))
        w_rows.append(pack_w(params['whh'][l]))
        b_x, b_hn = pack_b(params['bih'][l], params['bhh'][l])
        b_rows += [b_x, b_hn]
    w_rows.append(jnp.pad(params['fcw'].astype(f32).T, ((0, 0), (0, 3 * GL - D))))
    b_rows.append(jnp.pad(params['fcb'].astype(f32), (0, 3 * GL - D)))

    return dict(w=jnp.stack(w_rows), b=jnp.stack(b_rows))


# ----------------------------------------------------------------------------- wrapper
def rnn_decoder_forward(x, packed, hp=HPARAMS):
    C, H, L, D, T = (hp['CATEGORICAL_DIM'], hp['HIDDEN_DIM'], hp['RNN_LAYERS'],
                     hp['IN_DIM'], hp['SEQ_LEN'])
    GL = GATE_LANES

    # x.reshape(-1, 1, C).repeat(1, T, 1): every timestep sees the same vector,
    # so we only flatten to (B_eff, C); the kernel handles the repeat implicitly.
    xf = x.reshape(-1, x.shape[-1]).astype(jnp.float32)            # (B_eff, C)
    B = xf.shape[0]
    assert B % 8 == 0, "B_eff should be a multiple of 8 for sublane-aligned slices"
    x_pad = jnp.pad(xf, ((0, 0), (0, H - C)))                      # zero cols hit zero W rows

    w_slab, b_slab = packed['w'], packed['b']

    flops = 2 * B * H * 3 * GL                                     # layer-0 input gates
    flops += 2 * (L - 1) * T * B * H * 3 * GL                      # hoisted input gates
    flops += 2 * L * T * B * H * 3 * GL                            # recurrent hidden gates
    flops += 2 * T * B * H * D                                     # fc head
    transcendentals = 3 * L * T * B * H                            # 2x sigmoid + tanh / step
    bytes_accessed = 4 * (x_pad.size + w_slab.size + b_slab.size + B * T * D)

    kernel = partial(_rnn_decoder_kernel, T=T, L=L, H=H, D=D, GL=GL)
    out = pl.pallas_call(
        kernel,
        out_shape=jax.ShapeDtypeStruct((B, T * D), jnp.float32),
        in_specs=[pl.BlockSpec(memory_space=pltpu.MemorySpace.VMEM)] * 3,
        out_specs=pl.BlockSpec(memory_space=pltpu.MemorySpace.VMEM),
        cost_estimate=pl.CostEstimate(flops=flops,
                                      transcendentals=transcendentals,
                                      bytes_accessed=bytes_accessed),
    )(x_pad, w_slab, b_slab)

    return out.reshape(B, T, D)                                    # free relayout


# ----------------------------------------------------------------------------- params
def init_params(key, hp=HPARAMS):
    C, H, L, D = hp['CATEGORICAL_DIM'], hp['HIDDEN_DIM'], hp['RNN_LAYERS'], hp['IN_DIM']
    k = 1.0 / float(H) ** 0.5
    keys = jax.random.split(key, 4 * L + 2)

    def u(kk, shape, bound):
        return jax.random.uniform(kk, shape, jnp.float32, -bound, bound)

    wih, whh, bih, bhh = [], [], [], []
    for l in range(L):
        in_sz = C if l == 0 else H
        wih.append(u(keys[4 * l + 0], (3 * H, in_sz), k))
        whh.append(u(keys[4 * l + 1], (3 * H, H), k))
        bih.append(u(keys[4 * l + 2], (3 * H,), k))
        bhh.append(u(keys[4 * l + 3], (3 * H,), k))
    fcw = u(keys[-2], (D, H), k)
    fcb = u(keys[-1], (D,), k)
    return dict(wih=wih, whh=whh, bih=bih, bhh=bhh, fcw=fcw, fcb=fcb)


# ----------------------------------------------------------------------------- reference
def reference_forward(x, params, hp=HPARAMS):
    """Pure-JAX re-implementation of the PyTorch forward (for verification)."""
    C, H, L, D, T = (hp['CATEGORICAL_DIM'], hp['HIDDEN_DIM'], hp['RNN_LAYERS'],
                     hp['IN_DIM'], hp['SEQ_LEN'])
    xf = x.reshape(-1, x.shape[-1]).astype(jnp.float32)
    B = xf.shape[0]
    seq = jnp.repeat(xf[:, None, :], T, axis=1)                    # (B, T, C)
    for l in range(L):
        wih, whh = params['wih'][l], params['whh'][l]
        bih, bhh = params['bih'][l], params['bhh'][l]

        def cell(h, x_t):
            xg = x_t @ wih.T + bih
            hg = h @ whh.T + bhh
            r = jax.nn.sigmoid(xg[:, :H] + hg[:, :H])
            z = jax.nn.sigmoid(xg[:, H:2 * H] + hg[:, H:2 * H])
            n = jnp.tanh(xg[:, 2 * H:] + r * hg[:, 2 * H:])
            h_new = (1.0 - z) * n + z * h
            return h_new, h_new

        _, ys = lax.scan(cell, jnp.zeros((B, H), jnp.float32), jnp.swapaxes(seq, 0, 1))
        seq = jnp.swapaxes(ys, 0, 1)
    return seq @ params['fcw'].T + params['fcb']


# ----------------------------------------------------------------------------- main
if __name__ == "__main__":
    key = jax.random.PRNGKey(0)
    k_param, k_x = jax.random.split(key)

    params = init_params(k_param, HPARAMS)
    packed = pack_params(params, HPARAMS)          # one-time parameter prep

    # latent input; forward flattens leading dims: (2, 4, 8) -> B_eff = 8 sequences
    x = jax.random.normal(k_x, (2, 4, HPARAMS['CATEGORICAL_DIM']), dtype=jnp.float32)

    fwd = jax.jit(rnn_decoder_forward)
    out = jax.block_until_ready(fwd(x, packed))

    ref = jax.block_until_ready(reference_forward(x, params, HPARAMS))
    assert out.shape == (8, HPARAMS['SEQ_LEN'], HPARAMS['IN_DIM']), out.shape
    err = float(jnp.max(jnp.abs(out - ref)))
    assert err < 2e-4, err

    print("KERNEL_OK")
</pallas_src>

<mosaic_0001>
module attributes {stable_mosaic.version = 11 : i64} {
  func.func @_rnn_decoder_kernel(%arg0: memref<8x32xf32, #tpu.memory_space<vmem>>, %arg1: memref<5x32x384xf32, #tpu.memory_space<vmem>>, %arg2: memref<5x384xf32, #tpu.memory_space<vmem>>, %arg3: memref<8x128xf32, #tpu.memory_space<vmem>>) attributes {dimension_semantics = [], scalar_prefetch = 0 : i64, scratch_operands = 0 : i64, tpu.core_type = #tpu.core_type<tc>} {
    %c0 = arith.constant 0 : index
    %c0_0 = arith.constant 0 : index
    %0 = vector.load %arg0[%c0, %c0_0] : memref<8x32xf32, #tpu.memory_space<vmem>>, vector<8x32xf32>
    %c0_1 = arith.constant 0 : index
    %c0_2 = arith.constant 0 : index
    %c0_3 = arith.constant 0 : index
    %1 = vector.load %arg1[%c0_1, %c0_2, %c0_3] : memref<5x32x384xf32, #tpu.memory_space<vmem>>, vector<1x32x384xf32>
    %2 = vector.shape_cast %1 : vector<1x32x384xf32> to vector<32x384xf32>
    %c1 = arith.constant 1 : index
    %c0_4 = arith.constant 0 : index
    %c0_5 = arith.constant 0 : index
    %3 = vector.load %arg1[%c1, %c0_4, %c0_5] : memref<5x32x384xf32, #tpu.memory_space<vmem>>, vector<1x32x384xf32>
    %4 = vector.shape_cast %3 : vector<1x32x384xf32> to vector<32x384xf32>
    %c0_6 = arith.constant 0 : index
    %c0_7 = arith.constant 0 : index
    %5 = vector.load %arg2[%c0_6, %c0_7] : memref<5x384xf32, #tpu.memory_space<vmem>>, vector<1x384xf32>
    %c1_8 = arith.constant 1 : index
    %c0_9 = arith.constant 0 : index
    %6 = vector.load %arg2[%c1_8, %c0_9] : memref<5x384xf32, #tpu.memory_space<vmem>>, vector<1x32xf32>
    %cst = arith.constant dense<0.000000e+00> : vector<8x384xf32>
    %7 = tpu.matmul %0, %2, %cst {dimension_numbers = #tpu.dot_dimension_numbers<[1], [0], [0], [1], [0, 0, 1, 1], [], []>} : vector<8x32xf32>, vector<32x384xf32>, vector<8x384xf32> -> vector<8x384xf32>
    %8 = vector.broadcast %5 : vector<1x384xf32> to vector<8x384xf32>
    %9 = arith.addf %7, %8 : vector<8x384xf32>
    %10 = vector.extract_strided_slice %9 {offsets = [0, 0], sizes = [8, 32], strides = [1, 1]} : vector<8x384xf32> to vector<8x32xf32>
    %11 = vector.extract_strided_slice %9 {offsets = [0, 128], sizes = [8, 32], strides = [1, 1]} : vector<8x384xf32> to vector<8x32xf32>
    %12 = vector.extract_strided_slice %9 {offsets = [0, 256], sizes = [8, 32], strides = [1, 1]} : vector<8x384xf32> to vector<8x32xf32>
    %cst_10 = arith.constant 0.000000e+00 : f32
    %13 = vector.broadcast %cst_10 : f32 to vector<8x32xf32>
    %cst_11 = arith.constant dense<0.000000e+00> : vector<8x384xf32>
    %14 = tpu.matmul %13, %4, %cst_11 {dimension_numbers = #tpu.dot_dimension_numbers<[1], [0], [0], [1], [0, 0, 1, 1], [], []>} : vector<8x32xf32>, vector<32x384xf32>, vector<8x384xf32> -> vector<8x384xf32>
    %15 = vector.extract_strided_slice %14 {offsets = [0, 0], sizes = [8, 32], strides = [1, 1]} : vector<8x384xf32> to vector<8x32xf32>
    %16 = arith.addf %10, %15 : vector<8x32xf32>
    %17 = arith.negf %16 : vector<8x32xf32>
    %18 = math.exp %17 : vector<8x32xf32>
    %cst_12 = arith.constant 1.000000e+00 : f32
    %19 = vector.broadcast %cst_12 : f32 to vector<8x32xf32>
    %20 = arith.addf %19, %18 : vector<8x32xf32>
    %21 = arith.divf %19, %20 : vector<8x32xf32>
    %22 = vector.extract_strided_slice %14 {offsets = [0, 128], sizes = [8, 32], strides = [1, 1]} : vector<8x384xf32> to vector<8x32xf32>
    %23 = arith.addf %11, %22 : vector<8x32xf32>
    %24 = arith.negf %23 : vector<8x32xf32>
    %25 = math.exp %24 : vector<8x32xf32>
    %cst_13 = arith.constant 1.000000e+00 : f32
    %26 = vector.broadcast %cst_13 : f32 to vector<8x32xf32>
    %27 = arith.addf %26, %25 : vector<8x32xf32>
    %28 = arith.divf %26, %27 : vector<8x32xf32>
    %29 = vector.extract_strided_slice %14 {offsets = [0, 256], sizes = [8, 32], strides = [1, 1]} : vector<8x384xf32> to vector<8x32xf32>
    %30 = vector.broadcast %6 : vector<1x32xf32> to vector<8x32xf32>
    %31 = arith.addf %29, %30 : vector<8x32xf32>
    %32 = arith.mulf %21, %31 : vector<8x32xf32>
    %33 = arith.addf %12, %32 : vector<8x32xf32>
    %34 = math.tanh %33 : vector<8x32xf32>
    %cst_14 = arith.constant 1.000000e+00 : f32
    %35 = vector.broadcast %cst_14 : f32 to vector<8x32xf32>
    %36 = arith.subf %35, %28 : vector<8x32xf32>
    %37 = arith.mulf %36, %34 : vector<8x32xf32>
    %38 = arith.mulf %28, %13 : vector<8x32xf32>
    %39 = arith.addf %37, %38 : vector<8x32xf32>
    %cst_15 = arith.constant dense<0.000000e+00> : vector<8x384xf32>
    %40 = tpu.matmul %39, %4, %cst_15 {dimension_numbers = #tpu.dot_dimension_numbers<[1], [0], [0], [1], [0, 0, 1, 1], [], []>} : vector<8x32xf32>, vector<32x384xf32>, vector<8x384xf32> -> vector<8x384xf32>
    %41 = vector.extract_strided_slice %40 {offsets = [0, 0], sizes = [8, 32], strides = [1, 1]} : vector<8x384xf32> to vector<8x32xf32>
    %42 = arith.addf %10, %41 : vector<8x32xf32>
    %43 = arith.negf %42 : vector<8x32xf32>
    %44 = math.exp %43 : vector<8x32xf32>
    %cst_16 = arith.constant 1.000000e+00 : f32
    %45 = vector.broadcast %cst_16 : f32 to vector<8x32xf32>
    %46 = arith.addf %45, %44 : vector<8x32xf32>
    %47 = arith.divf %45, %46 : vector<8x32xf32>
    %48 = vector.extract_strided_slice %40 {offsets = [0, 128], sizes = [8, 32], strides = [1, 1]} : vector<8x384xf32> to vector<8x32xf32>
    %49 = arith.addf %11, %48 : vector<8x32xf32>
    %50 = arith.negf %49 : vector<8x32xf32>
    %51 = math.exp %50 : vector<8x32xf32>
    %cst_17 = arith.constant 1.000000e+00 : f32
    %52 = vector.broadcast %cst_17 : f32 to vector<8x32xf32>
    %53 = arith.addf %52, %51 : vector<8x32xf32>
    %54 = arith.divf %52, %53 : vector<8x32xf32>
    %55 = vector.extract_strided_slice %40 {offsets = [0, 256], sizes = [8, 32], strides = [1, 1]} : vector<8x384xf32> to vector<8x32xf32>
    %56 = vector.broadcast %6 : vector<1x32xf32> to vector<8x32xf32>
    %57 = arith.addf %55, %56 : vector<8x32xf32>
    %58 = arith.mulf %47, %57 : vector<8x32xf32>
    %59 = arith.addf %12, %58 : vector<8x32xf32>
    %60 = math.tanh %59 : vector<8x32xf32>
    %cst_18 = arith.constant 1.000000e+00 : f32
    %61 = vector.broadcast %cst_18 : f32 to vector<8x32xf32>
    %62 = arith.subf %61, %54 : vector<8x32xf32>
    %63 = arith.mulf %62, %60 : vector<8x32xf32>
    %64 = arith.mulf %54, %39 : vector<8x32xf32>
    %65 = arith.addf %63, %64 : vector<8x32xf32>
    %cst_19 = arith.constant dense<0.000000e+00> : vector<8x384xf32>
    %66 = tpu.matmul %65, %4, %cst_19 {dimension_numbers = #tpu.dot_dimension_numbers<[1], [0], [0], [1], [0, 0, 1, 1], [], []>} : vector<8x32xf32>, vector<32x384xf32>, vector<8x384xf32> -> vector<8x384xf32>
    %67 = vector.extract_strided_slice %66 {offsets = [0, 0], sizes = [8, 32], strides = [1, 1]} : vector<8x384xf32> to vector<8x32xf32>
    %68 = arith.addf %10, %67 : vector<8x32xf32>
    %69 = arith.negf %68 : vector<8x32xf32>
    %70 = math.exp %69 : vector<8x32xf32>
    %cst_20 = arith.constant 1.000000e+00 : f32
    %71 = vector.broadcast %cst_20 : f32 to vector<8x32xf32>
    %72 = arith.addf %71, %70 : vector<8x32xf32>
    %73 = arith.divf %71, %72 : vector<8x32xf32>
    %74 = vector.extract_strided_slice %66 {offsets = [0, 128], sizes = [8, 32], strides = [1, 1]} : vector<8x384xf32> to vector<8x32xf32>
    %75 = arith.addf %11, %74 : vector<8x32xf32>
    %76 = arith.negf %75 : vector<8x32xf32>
    %77 = math.exp %76 : vector<8x32xf32>
    %cst_21 = arith.constant 1.000000e+00 : f32
    %78 = vector.broadcast %cst_21 : f32 to vector<8x32xf32>
    %79 = arith.addf %78, %77 : vector<8x32xf32>
    %80 = arith.divf %78, %79 : vector<8x32xf32>
    %81 = vector.extract_strided_slice %66 {offsets = [0, 256], sizes = [8, 32], strides = [1, 1]} : vector<8x384xf32> to vector<8x32xf32>
    %82 = vector.broadcast %6 : vector<1x32xf32> to vector<8x32xf32>
    %83 = arith.addf %81, %82 : vector<8x32xf32>
    %84 = arith.mulf %73, %83 : vector<8x32xf32>
    %85 = arith.addf %12, %84 : vector<8x32xf32>
    %86 = math.tanh %85 : vector<8x32xf32>
    %cst_22 = arith.constant 1.000000e+00 : f32
    %87 = vector.broadcast %cst_22 : f32 to vector<8x32xf32>
    %88 = arith.subf %87, %80 : vector<8x32xf32>
    %89 = arith.mulf %88, %86 : vector<8x32xf32>
    %90 = arith.mulf %80, %65 : vector<8x32xf32>
    %91 = arith.addf %89, %90 : vector<8x32xf32>
    %cst_23 = arith.constant dense<0.000000e+00> : vector<8x384xf32>
    %92 = tpu.matmul %91, %4, %cst_23 {dimension_numbers = #tpu.dot_dimension_numbers<[1], [0], [0], [1], [0, 0, 1, 1], [], []>} : vector<8x32xf32>, vector<32x384xf32>, vector<8x384xf32> -> vector<8x384xf32>
    %93 = vector.extract_strided_slice %92 {offsets = [0, 0], sizes = [8, 32], strides = [1, 1]} : vector<8x384xf32> to vector<8x32xf32>
    %94 = arith.addf %10, %93 : vector<8x32xf32>
    %95 = arith.negf %94 : vector<8x32xf32>
    %96 = math.exp %95 : vector<8x32xf32>
    %cst_24 = arith.constant 1.000000e+00 : f32
    %97 = vector.broadcast %cst_24 : f32 to vector<8x32xf32>
    %98 = arith.addf %97, %96 : vector<8x32xf32>
    %99 = arith.divf %97, %98 : vector<8x32xf32>
    %100 = vector.extract_strided_slice %92 {offsets = [0, 128], sizes = [8, 32], strides = [1, 1]} : vector<8x384xf32> to vector<8x32xf32>
    %101 = arith.addf %11, %100 : vector<8x32xf32>
    %102 = arith.negf %101 : vector<8x32xf32>
    %103 = math.exp %102 : vector<8x32xf32>
    %cst_25 = arith.constant 1.000000e+00 : f32
    %104 = vector.broadcast %cst_25 : f32 to vector<8x32xf32>
    %105 = arith.addf %104, %103 : vector<8x32xf32>
    %106 = arith.divf %104, %105 : vector<8x32xf32>
    %107 = vector.extract_strided_slice %92 {offsets = [0, 256], sizes = [8, 32], strides = [1, 1]} : vector<8x384xf32> to vector<8x32xf32>
    %108 = vector.broadcast %6 : vector<1x32xf32> to vector<8x32xf32>
    %109 = arith.addf %107, %108 : vector<8x32xf32>
    %110 = arith.mulf %99, %109 : vector<8x32xf32>
    %111 = arith.addf %12, %110 : vector<8x32xf32>
    %112 = math.tanh %111 : vector<8x32xf32>
    %cst_26 = arith.constant 1.000000e+00 : f32
    %113 = vector.broadcast %cst_26 : f32 to vector<8x32xf32>
    %114 = arith.subf %113, %106 : vector<8x32xf32>
    %115 = arith.mulf %114, %112 : vector<8x32xf32>
    %116 = arith.mulf %106, %91 : vector<8x32xf32>
    %117 = arith.addf %115, %116 : vector<8x32xf32>
    %cst_27 = arith.constant dense<0.000000e+00> : vector<8x384xf32>
    %118 = tpu.matmul %117, %4, %cst_27 {dimension_numbers = #tpu.dot_dimension_numbers<[1], [0], [0], [1], [0, 0, 1, 1], [], []>} : vector<8x32xf32>, vector<32x384xf32>, vector<8x384xf32> -> vector<8x384xf32>
    %119 = vector.extract_strided_slice %118 {offsets = [0, 0], sizes = [8, 32], strides = [1, 1]} : vector<8x384xf32> to vector<8x32xf32>
    %120 = arith.addf %10, %119 : vector<8x32xf32>
    %121 = arith.negf %120 : vector<8x32xf32>
    %122 = math.exp %121 : vector<8x32xf32>
    %cst_28 = arith.constant 1.000000e+00 : f32
    %123 = vector.broadcast %cst_28 : f32 to vector<8x32xf32>
    %124 = arith.addf %123, %122 : vector<8x32xf32>
    %125 = arith.divf %123, %124 : vector<8x32xf32>
    %126 = vector.extract_strided_slice %118 {offsets = [0, 128], sizes = [8, 32], strides = [1, 1]} : vector<8x384xf32> to vector<8x32xf32>
    %127 = arith.addf %11, %126 : vector<8x32xf32>
    %128 = arith.negf %127 : vector<8x32xf32>
    %129 = math.exp %128 : vector<8x32xf32>
    %cst_29 = arith.constant 1.000000e+00 : f32
    %130 = vector.broadcast %cst_29 : f32 to vector<8x32xf32>
    %131 = arith.addf %130, %129 : vector<8x32xf32>
    %132 = arith.divf %130, %131 : vector<8x32xf32>
    %133 = vector.extract_strided_slice %118 {offsets = [0, 256], sizes = [8, 32], strides = [1, 1]} : vector<8x384xf32> to vector<8x32xf32>
    %134 = vector.broadcast %6 : vector<1x32xf32> to vector<8x32xf32>
    %135 = arith.addf %133, %134 : vector<8x32xf32>
    %136 = arith.mulf %125, %135 : vector<8x32xf32>
    %137 = arith.addf %12, %136 : vector<8x32xf32>
    %138 = math.tanh %137 : vector<8x32xf32>
    %cst_30 = arith.constant 1.000000e+00 : f32
    %139 = vector.broadcast %cst_30 : f32 to vector<8x32xf32>
    %140 = arith.subf %139, %132 : vector<8x32xf32>
    %141 = arith.mulf %140, %138 : vector<8x32xf32>
    %142 = arith.mulf %132, %117 : vector<8x32xf32>
    %143 = arith.addf %141, %142 : vector<8x32xf32>
    %cst_31 = arith.constant dense<0.000000e+00> : vector<8x384xf32>
    %144 = tpu.matmul %143, %4, %cst_31 {dimension_numbers = #tpu.dot_dimension_numbers<[1], [0], [0], [1], [0, 0, 1, 1], [], []>} : vector<8x32xf32>, vector<32x384xf32>, vector<8x384xf32> -> vector<8x384xf32>
    %145 = vector.extract_strided_slice %144 {offsets = [0, 0], sizes = [8, 32], strides = [1, 1]} : vector<8x384xf32> to vector<8x32xf32>
    %146 = arith.addf %10, %145 : vector<8x32xf32>
    %147 = arith.negf %146 : vector<8x32xf32>
    %148 = math.exp %147 : vector<8x32xf32>
    %cst_32 = arith.constant 1.000000e+00 : f32
    %149 = vector.broadcast %cst_32 : f32 to vector<8x32xf32>
    %150 = arith.addf %149, %148 : vector<8x32xf32>
    %151 = arith.divf %149, %150 : vector<8x32xf32>
    %152 = vector.extract_strided_slice %144 {offsets = [0, 128], sizes = [8, 32], strides = [1, 1]} : vector<8x384xf32> to vector<8x32xf32>
    %153 = arith.addf %11, %152 : vector<8x32xf32>
    %154 = arith.negf %153 : vector<8x32xf32>
    %155 = math.exp %154 : vector<8x32xf32>
    %cst_33 = arith.constant 1.000000e+00 : f32
    %156 = vector.broadcast %cst_33 : f32 to vector<8x32xf32>
    %157 = arith.addf %156, %155 : vector<8x32xf32>
    %158 = arith.divf %156, %157 : vector<8x32xf32>
    %159 = vector.extract_strided_slice %144 {offsets = [0, 256], sizes = [8, 32], strides = [1, 1]} : vector<8x384xf32> to vector<8x32xf32>
    %160 = vector.broadcast %6 : vector<1x32xf32> to vector<8x32xf32>
    %161 = arith.addf %159, %160 : vector<8x32xf32>
    %162 = arith.mulf %151, %161 : vector<8x32xf32>
    %163 = arith.addf %12, %162 : vector<8x32xf32>
    %164 = math.tanh %163 : vector<8x32xf32>
    %cst_34 = arith.constant 1.000000e+00 : f32
    %165 = vector.broadcast %cst_34 : f32 to vector<8x32xf32>
    %166 = arith.subf %165, %158 : vector<8x32xf32>
    %167 = arith.mulf %166, %164 : vector<8x32xf32>
    %168 = arith.mulf %158, %143 : vector<8x32xf32>
    %169 = arith.addf %167, %168 : vector<8x32xf32>
    %cst_35 = arith.constant dense<0.000000e+00> : vector<8x384xf32>
    %170 = tpu.matmul %169, %4, %cst_35 {dimension_numbers = #tpu.dot_dimension_numbers<[1], [0], [0], [1], [0, 0, 1, 1], [], []>} : vector<8x32xf32>, vector<32x384xf32>, vector<8x384xf32> -> vector<8x384xf32>
    %171 = vector.extract_strided_slice %170 {offsets = [0, 0], sizes = [8, 32], strides = [1, 1]} : vector<8x384xf32> to vector<8x32xf32>
    %172 = arith.addf %10, %171 : vector<8x32xf32>
    %173 = arith.negf %172 : vector<8x32xf32>
    %174 = math.exp %173 : vector<8x32xf32>
    %cst_36 = arith.constant 1.000000e+00 : f32
    %175 = vector.broadcast %cst_36 : f32 to vector<8x32xf32>
    %176 = arith.addf %175, %174 : vector<8x32xf32>
    %177 = arith.divf %175, %176 : vector<8x32xf32>
    %178 = vector.extract_strided_slice %170 {offsets = [0, 128], sizes = [8, 32], strides = [1, 1]} : vector<8x384xf32> to vector<8x32xf32>
    %179 = arith.addf %11, %178 : vector<8x32xf32>
    %180 = arith.negf %179 : vector<8x32xf32>
    %181 = math.exp %180 : vector<8x32xf32>
    %cst_37 = arith.constant 1.000000e+00 : f32
    %182 = vector.broadcast %cst_37 : f32 to vector<8x32xf32>
    %183 = arith.addf %182, %181 : vector<8x32xf32>
    %184 = arith.divf %182, %183 : vector<8x32xf32>
    %185 = vector.extract_strided_slice %170 {offsets = [0, 256], sizes = [8, 32], strides = [1, 1]} : vector<8x384xf32> to vector<8x32xf32>
    %186 = vector.broadcast %6 : vector<1x32xf32> to vector<8x32xf32>
    %187 = arith.addf %185, %186 : vector<8x32xf32>
    %188 = arith.mulf %177, %187 : vector<8x32xf32>
    %189 = arith.addf %12, %188 : vector<8x32xf32>
    %190 = math.tanh %189 : vector<8x32xf32>
    %cst_38 = arith.constant 1.000000e+00 : f32
    %191 = vector.broadcast %cst_38 : f32 to vector<8x32xf32>
    %192 = arith.subf %191, %184 : vector<8x32xf32>
    %193 = arith.mulf %192, %190 : vector<8x32xf32>
    %194 = arith.mulf %184, %169 : vector<8x32xf32>
    %195 = arith.addf %193, %194 : vector<8x32xf32>
    %cst_39 = arith.constant dense<0.000000e+00> : vector<8x384xf32>
    %196 = tpu.matmul %195, %4, %cst_39 {dimension_numbers = #tpu.dot_dimension_numbers<[1], [0], [0], [1], [0, 0, 1, 1], [], []>} : vector<8x32xf32>, vector<32x384xf32>, vector<8x384xf32> -> vector<8x384xf32>
    %197 = vector.extract_strided_slice %196 {offsets = [0, 0], sizes = [8, 32], strides = [1, 1]} : vector<8x384xf32> to vector<8x32xf32>
    %198 = arith.addf %10, %197 : vector<8x32xf32>
    %199 = arith.negf %198 : vector<8x32xf32>
    %200 = math.exp %199 : vector<8x32xf32>
    %cst_40 = arith.constant 1.000000e+00 : f32
    %201 = vector.broadcast %cst_40 : f32 to vector<8x32xf32>
    %202 = arith.addf %201, %200 : vector<8x32xf32>
    %203 = arith.divf %201, %202 : vector<8x32xf32>
    %204 = vector.extract_strided_slice %196 {offsets = [0, 128], sizes = [8, 32], strides = [1, 1]} : vector<8x384xf32> to vector<8x32xf32>
    %205 = arith.addf %11, %204 : vector<8x32xf32>
    %206 = arith.negf %205 : vector<8x32xf32>
    %207 = math.exp %206 : vector<8x32xf32>
    %cst_41 = arith.constant 1.000000e+00 : f32
    %208 = vector.broadcast %cst_41 : f32 to vector<8x32xf32>
    %209 = arith.addf %208, %207 : vector<8x32xf32>
    %210 = arith.divf %208, %209 : vector<8x32xf32>
    %211 = vector.extract_strided_slice %196 {offsets = [0, 256], sizes = [8, 32], strides = [1, 1]} : vector<8x384xf32> to vector<8x32xf32>
    %212 = vector.broadcast %6 : vector<1x32xf32> to vector<8x32xf32>
    %213 = arith.addf %211, %212 : vector<8x32xf32>
    %214 = arith.mulf %203, %213 : vector<8x32xf32>
    %215 = arith.addf %12, %214 : vector<8x32xf32>
    %216 = math.tanh %215 : vector<8x32xf32>
    %cst_42 = arith.constant 1.000000e+00 : f32
    %217 = vector.broadcast %cst_42 : f32 to vector<8x32xf32>
    %218 = arith.subf %217, %210 : vector<8x32xf32>
    %219 = arith.mulf %218, %216 : vector<8x32xf32>
    %220 = arith.mulf %210, %195 : vector<8x32xf32>
    %221 = arith.addf %219, %220 : vector<8x32xf32>
    %222 = tpu.concatenate %39, %65, %91, %117, %143, %169, %195, %221 in 0 : vector<8x32xf32>, vector<8x32xf32>, vector<8x32xf32>, vector<8x32xf32>, vector<8x32xf32>, vector<8x32xf32>, vector<8x32xf32>, vector<8x32xf32> -> vector<64x32xf32>
    %c2 = arith.constant 2 : index
    %c0_43 = arith.constant 0 : index
    %c0_44 = arith.constant 0 : index
    %223 = vector.load %arg1[%c2, %c0_43, %c0_44] : memref<5x32x384xf32, #tpu.memory_space<vmem>>, vector<1x32x384xf32>
    %224 = vector.shape_cast %223 : vector<1x32x384xf32> to vector<32x384xf32>
    %c3 = arith.constant 3 : index
    %c0_45 = arith.constant 0 : index
    %c0_46 = arith.constant 0 : index
    %225 = vector.load %arg1[%c3, %c0_45, %c0_46] : memref<5x32x384xf32, #tpu.memory_space<vmem>>, vector<1x32x384xf32>
    %226 = vector.shape_cast %225 : vector<1x32x384xf32> to vector<32x384xf32>
    %c2_47 = arith.constant 2 : index
    %c0_48 = arith.constant 0 : index
    %227 = vector.load %arg2[%c2_47, %c0_48] : memref<5x384xf32, #tpu.memory_space<vmem>>, vector<1x384xf32>
    %c3_49 = arith.constant 3 : index
    %c0_50 = arith.constant 0 : index
    %228 = vector.load %arg2[%c3_49, %c0_50] : memref<5x384xf32, #tpu.memory_space<vmem>>, vector<1x32xf32>
    %cst_51 = arith.constant dense<0.000000e+00> : vector<64x384xf32>
    %229 = tpu.matmul %222, %224, %cst_51 {dimension_numbers = #tpu.dot_dimension_numbers<[1], [0], [0], [1], [0, 0, 1, 1], [], []>} : vector<64x32xf32>, vector<32x384xf32>, vector<64x384xf32> -> vector<64x384xf32>
    %230 = vector.broadcast %227 : vector<1x384xf32> to vector<64x384xf32>
    %231 = arith.addf %229, %230 : vector<64x384xf32>
    %232 = vector.extract_strided_slice %231 {offsets = [0, 0], sizes = [64, 32], strides = [1, 1]} : vector<64x384xf32> to vector<64x32xf32>
    %233 = vector.extract_strided_slice %231 {offsets = [0, 128], sizes = [64, 32], strides = [1, 1]} : vector<64x384xf32> to vector<64x32xf32>
    %234 = vector.extract_strided_slice %231 {offsets = [0, 256], sizes = [64, 32], strides = [1, 1]} : vector<64x384xf32> to vector<64x32xf32>
    %cst_52 = arith.constant 0.000000e+00 : f32
    %235 = vector.broadcast %cst_52 : f32 to vector<8x32xf32>
    %236 = vector.extract_strided_slice %232 {offsets = [0, 0], sizes = [8, 32], strides = [1, 1]} : vector<64x32xf32> to vector<8x32xf32>
    %237 = vector.extract_strided_slice %233 {offsets = [0, 0], sizes = [8, 32], strides = [1, 1]} : vector<64x32xf32> to vector<8x32xf32>
    %238 = vector.extract_strided_slice %234 {offsets = [0, 0], sizes = [8, 32], strides = [1, 1]} : vector<64x32xf32> to vector<8x32xf32>
    %cst_53 = arith.constant dense<0.000000e+00> : vector<8x384xf32>
    %239 = tpu.matmul %235, %226, %cst_53 {dimension_numbers = #tpu.dot_dimension_numbers<[1], [0], [0], [1], [0, 0, 1, 1], [], []>} : vector<8x32xf32>, vector<32x384xf32>, vector<8x384xf32> -> vector<8x384xf32>
    %240 = vector.extract_strided_slice %239 {offsets = [0, 0], sizes = [8, 32], strides = [1, 1]} : vector<8x384xf32> to vector<8x32xf32>
    %241 = arith.addf %236, %240 : vector<8x32xf32>
    %242 = arith.negf %241 : vector<8x32xf32>
    %243 = math.exp %242 : vector<8x32xf32>
    %cst_54 = arith.constant 1.000000e+00 : f32
    %244 = vector.broadcast %cst_54 : f32 to vector<8x32xf32>
    %245 = arith.addf %244, %243 : vector<8x32xf32>
    %246 = arith.divf %244, %245 : vector<8x32xf32>
    %247 = vector.extract_strided_slice %239 {offsets = [0, 128], sizes = [8, 32], strides = [1, 1]} : vector<8x384xf32> to vector<8x32xf32>
    %248 = arith.addf %237, %247 : vector<8x32xf32>
    %249 = arith.negf %248 : vector<8x32xf32>
    %250 = math.exp %249 : vector<8x32xf32>
    %cst_55 = arith.constant 1.000000e+00 : f32
    %251 = vector.broadcast %cst_55 : f32 to vector<8x32xf32>
    %252 = arith.addf %251, %250 : vector<8x32xf32>
    %253 = arith.divf %251, %252 : vector<8x32xf32>
    %254 = vector.extract_strided_slice %239 {offsets = [0, 256], sizes = [8, 32], strides = [1, 1]} : vector<8x384xf32> to vector<8x32xf32>
    %255 = vector.broadcast %228 : vector<1x32xf32> to vector<8x32xf32>
    %256 = arith.addf %254, %255 : vector<8x32xf32>
    %257 = arith.mulf %246, %256 : vector<8x32xf32>
    %258 = arith.addf %238, %257 : vector<8x32xf32>
    %259 = math.tanh %258 : vector<8x32xf32>
    %cst_56 = arith.constant 1.000000e+00 : f32
    %260 = vector.broadcast %cst_56 : f32 to vector<8x32xf32>
    %261 = arith.subf %260, %253 : vector<8x32xf32>
    %262 = arith.mulf %261, %259 : vector<8x32xf32>
    %263 = arith.mulf %253, %235 : vector<8x32xf32>
    %264 = arith.addf %262, %263 : vector<8x32xf32>
    %265 = vector.extract_strided_slice %232 {offsets = [8, 0], sizes = [8, 32], strides = [1, 1]} : vector<64x32xf32> to vector<8x32xf32>
    %266 = vector.extract_strided_slice %233 {offsets = [8, 0], sizes = [8, 32], strides = [1, 1]} : vector<64x32xf32> to vector<8x32xf32>
    %267 = vector.extract_strided_slice %234 {offsets = [8, 0], sizes = [8, 32], strides = [1, 1]} : vector<64x32xf32> to vector<8x32xf32>
    %cst_57 = arith.constant dense<0.000000e+00> : vector<8x384xf32>
    %268 = tpu.matmul %264, %226, %cst_57 {dimension_numbers = #tpu.dot_dimension_numbers<[1], [0], [0], [1], [0, 0, 1, 1], [], []>} : vector<8x32xf32>, vector<32x384xf32>, vector<8x384xf32> -> vector<8x384xf32>
    %269 = vector.extract_strided_slice %268 {offsets = [0, 0], sizes = [8, 32], strides = [1, 1]} : vector<8x384xf32> to vector<8x32xf32>
    %270 = arith.addf %265, %269 : vector<8x32xf32>
    %271 = arith.negf %270 : vector<8x32xf32>
    %272 = math.exp %271 : vector<8x32xf32>
    %cst_58 = arith.constant 1.000000e+00 : f32
    %273 = vector.broadcast %cst_58 : f32 to vector<8x32xf32>
    %274 = arith.addf %273, %272 : vector<8x32xf32>
    %275 = arith.divf %273, %274 : vector<8x32xf32>
    %276 = vector.extract_strided_slice %268 {offsets = [0, 128], sizes = [8, 32], strides = [1, 1]} : vector<8x384xf32> to vector<8x32xf32>
    %277 = arith.addf %266, %276 : vector<8x32xf32>
    %278 = arith.negf %277 : vector<8x32xf32>
    %279 = math.exp %278 : vector<8x32xf32>
    %cst_59 = arith.constant 1.000000e+00 : f32
    %280 = vector.broadcast %cst_59 : f32 to vector<8x32xf32>
    %281 = arith.addf %280, %279 : vector<8x32xf32>
    %282 = arith.divf %280, %281 : vector<8x32xf32>
    %283 = vector.extract_strided_slice %268 {offsets = [0, 256], sizes = [8, 32], strides = [1, 1]} : vector<8x384xf32> to vector<8x32xf32>
    %284 = vector.broadcast %228 : vector<1x32xf32> to vector<8x32xf32>
    %285 = arith.addf %283, %284 : vector<8x32xf32>
    %286 = arith.mulf %275, %285 : vector<8x32xf32>
    %287 = arith.addf %267, %286 : vector<8x32xf32>
    %288 = math.tanh %287 : vector<8x32xf32>
    %cst_60 = arith.constant 1.000000e+00 : f32
    %289 = vector.broadcast %cst_60 : f32 to vector<8x32xf32>
    %290 = arith.subf %289, %282 : vector<8x32xf32>
    %291 = arith.mulf %290, %288 : vector<8x32xf32>
    %292 = arith.mulf %282, %264 : vector<8x32xf32>
    %293 = arith.addf %291, %292 : vector<8x32xf32>
    %294 = vector.extract_strided_slice %232 {offsets = [16, 0], sizes = [8, 32], strides = [1, 1]} : vector<64x32xf32> to vector<8x32xf32>
    %295 = vector.extract_strided_slice %233 {offsets = [16, 0], sizes = [8, 32], strides = [1, 1]} : vector<64x32xf32> to vector<8x32xf32>
    %296 = vector.extract_strided_slice %234 {offsets = [16, 0], sizes = [8, 32], strides = [1, 1]} : vector<64x32xf32> to vector<8x32xf32>
    %cst_61 = arith.constant dense<0.000000e+00> : vector<8x384xf32>
    %297 = tpu.matmul %293, %226, %cst_61 {dimension_numbers = #tpu.dot_dimension_numbers<[1], [0], [0], [1], [0, 0, 1, 1], [], []>} : vector<8x32xf32>, vector<32x384xf32>, vector<8x384xf32> -> vector<8x384xf32>
    %298 = vector.extract_strided_slice %297 {offsets = [0, 0], sizes = [8, 32], strides = [1, 1]} : vector<8x384xf32> to vector<8x32xf32>
    %299 = arith.addf %294, %298 : vector<8x32xf32>
    %300 = arith.negf %299 : vector<8x32xf32>
    %301 = math.exp %300 : vector<8x32xf32>
    %cst_62 = arith.constant 1.000000e+00 : f32
    %302 = vector.broadcast %cst_62 : f32 to vector<8x32xf32>
    %303 = arith.addf %302, %301 : vector<8x32xf32>
    %304 = arith.divf %302, %303 : vector<8x32xf32>
    %305 = vector.extract_strided_slice %297 {offsets = [0, 128], sizes = [8, 32], strides = [1, 1]} : vector<8x384xf32> to vector<8x32xf32>
    %306 = arith.addf %295, %305 : vector<8x32xf32>
    %307 = arith.negf %306 : vector<8x32xf32>
    %308 = math.exp %307 : vector<8x32xf32>
    %cst_63 = arith.constant 1.000000e+00 : f32
    %309 = vector.broadcast %cst_63 : f32 to vector<8x32xf32>
    %310 = arith.addf %309, %308 : vector<8x32xf32>
    %311 = arith.divf %309, %310 : vector<8x32xf32>
    %312 = vector.extract_strided_slice %297 {offsets = [0, 256], sizes = [8, 32], strides = [1, 1]} : vector<8x384xf32> to vector<8x32xf32>
    %313 = vector.broadcast %228 : vector<1x32xf32> to vector<8x32xf32>
    %314 = arith.addf %312, %313 : vector<8x32xf32>
    %315 = arith.mulf %304, %314 : vector<8x32xf32>
    %316 = arith.addf %296, %315 : vector<8x32xf32>
    %317 = math.tanh %316 : vector<8x32xf32>
    %cst_64 = arith.constant 1.000000e+00 : f32
    %318 = vector.broadcast %cst_64 : f32 to vector<8x32xf32>
    %319 = arith.subf %318, %311 : vector<8x32xf32>
    %320 = arith.mulf %319, %317 : vector<8x32xf32>
    %321 = arith.mulf %311, %293 : vector<8x32xf32>
    %322 = arith.addf %320, %321 : vector<8x32xf32>
    %323 = vector.extract_strided_slice %232 {offsets = [24, 0], sizes = [8, 32], strides = [1, 1]} : vector<64x32xf32> to vector<8x32xf32>
    %324 = vector.extract_strided_slice %233 {offsets = [24, 0], sizes = [8, 32], strides = [1, 1]} : vector<64x32xf32> to vector<8x32xf32>
    %325 = vector.extract_strided_slice %234 {offsets = [24, 0], sizes = [8, 32], strides = [1, 1]} : vector<64x32xf32> to vector<8x32xf32>
    %cst_65 = arith.constant dense<0.000000e+00> : vector<8x384xf32>
    %326 = tpu.matmul %322, %226, %cst_65 {dimension_numbers = #tpu.dot_dimension_numbers<[1], [0], [0], [1], [0, 0, 1, 1], [], []>} : vector<8x32xf32>, vector<32x384xf32>, vector<8x384xf32> -> vector<8x384xf32>
    %327 = vector.extract_strided_slice %326 {offsets = [0, 0], sizes = [8, 32], strides = [1, 1]} : vector<8x384xf32> to vector<8x32xf32>
    %328 = arith.addf %323, %327 : vector<8x32xf32>
    %329 = arith.negf %328 : vector<8x32xf32>
    %330 = math.exp %329 : vector<8x32xf32>
    %cst_66 = arith.constant 1.000000e+00 : f32
    %331 = vector.broadcast %cst_66 : f32 to vector<8x32xf32>
    %332 = arith.addf %331, %330 : vector<8x32xf32>
    %333 = arith.divf %331, %332 : vector<8x32xf32>
    %334 = vector.extract_strided_slice %326 {offsets = [0, 128], sizes = [8, 32], strides = [1, 1]} : vector<8x384xf32> to vector<8x32xf32>
    %335 = arith.addf %324, %334 : vector<8x32xf32>
    %336 = arith.negf %335 : vector<8x32xf32>
    %337 = math.exp %336 : vector<8x32xf32>
    %cst_67 = arith.constant 1.000000e+00 : f32
    %338 = vector.broadcast %cst_67 : f32 to vector<8x32xf32>
    %339 = arith.addf %338, %337 : vector<8x32xf32>
    %340 = arith.divf %338, %339 : vector<8x32xf32>
    %341 = vector.extract_strided_slice %326 {offsets = [0, 256], sizes = [8, 32], strides = [1, 1]} : vector<8x384xf32> to vector<8x32xf32>
    %342 = vector.broadcast %228 : vector<1x32xf32> to vector<8x32xf32>
    %343 = arith.addf %341, %342 : vector<8x32xf32>
    %344 = arith.mulf %333, %343 : vector<8x32xf32>
    %345 = arith.addf %325, %344 : vector<8x32xf32>
    %346 = math.tanh %345 : vector<8x32xf32>
    %cst_68 = arith.constant 1.000000e+00 : f32
    %347 = vector.broadcast %cst_68 : f32 to vector<8x32xf32>
    %348 = arith.subf %347, %340 : vector<8x32xf32>
    %349 = arith.mulf %348, %346 : vector<8x32xf32>
    %350 = arith.mulf %340, %322 : vector<8x32xf32>
    %351 = arith.addf %349, %350 : vector<8x32xf32>
    %352 = vector.extract_strided_slice %232 {offsets = [32, 0], sizes = [8, 32], strides = [1, 1]} : vector<64x32xf32> to vector<8x32xf32>
    %353 = vector.extract_strided_slice %233 {offsets = [32, 0], sizes = [8, 32], strides = [1, 1]} : vector<64x32xf32> to vector<8x32xf32>
    %354 = vector.extract_strided_slice %234 {offsets = [32, 0], sizes = [8, 32], strides = [1, 1]} : vector<64x32xf32> to vector<8x32xf32>
    %cst_69 = arith.constant dense<0.000000e+00> : vector<8x384xf32>
    %355 = tpu.matmul %351, %226, %cst_69 {dimension_numbers = #tpu.dot_dimension_numbers<[1], [0], [0], [1], [0, 0, 1, 1], [], []>} : vector<8x32xf32>, vector<32x384xf32>, vector<8x384xf32> -> vector<8x384xf32>
    %356 = vector.extract_strided_slice %355 {offsets = [0, 0], sizes = [8, 32], strides = [1, 1]} : vector<8x384xf32> to vector<8x32xf32>
    %357 = arith.addf %352, %356 : vector<8x32xf32>
    %358 = arith.negf %357 : vector<8x32xf32>
    %359 = math.exp %358 : vector<8x32xf32>
    %cst_70 = arith.constant 1.000000e+00 : f32
    %360 = vector.broadcast %cst_70 : f32 to vector<8x32xf32>
    %361 = arith.addf %360, %359 : vector<8x32xf32>
    %362 = arith.divf %360, %361 : vector<8x32xf32>
    %363 = vector.extract_strided_slice %355 {offsets = [0, 128], sizes = [8, 32], strides = [1, 1]} : vector<8x384xf32> to vector<8x32xf32>
    %364 = arith.addf %353, %363 : vector<8x32xf32>
    %365 = arith.negf %364 : vector<8x32xf32>
    %366 = math.exp %365 : vector<8x32xf32>
    %cst_71 = arith.constant 1.000000e+00 : f32
    %367 = vector.broadcast %cst_71 : f32 to vector<8x32xf32>
    %368 = arith.addf %367, %366 : vector<8x32xf32>
    %369 = arith.divf %367, %368 : vector<8x32xf32>
    %370 = vector.extract_strided_slice %355 {offsets = [0, 256], sizes = [8, 32], strides = [1, 1]} : vector<8x384xf32> to vector<8x32xf32>
    %371 = vector.broadcast %228 : vector<1x32xf32> to vector<8x32xf32>
    %372 = arith.addf %370, %371 : vector<8x32xf32>
    %373 = arith.mulf %362, %372 : vector<8x32xf32>
    %374 = arith.addf %354, %373 : vector<8x32xf32>
    %375 = math.tanh %374 : vector<8x32xf32>
    %cst_72 = arith.constant 1.000000e+00 : f32
    %376 = vector.broadcast %cst_72 : f32 to vector<8x32xf32>
    %377 = arith.subf %376, %369 : vector<8x32xf32>
    %378 = arith.mulf %377, %375 : vector<8x32xf32>
    %379 = arith.mulf %369, %351 : vector<8x32xf32>
    %380 = arith.addf %378, %379 : vector<8x32xf32>
    %381 = vector.extract_strided_slice %232 {offsets = [40, 0], sizes = [8, 32], strides = [1, 1]} : vector<64x32xf32> to vector<8x32xf32>
    %382 = vector.extract_strided_slice %233 {offsets = [40, 0], sizes = [8, 32], strides = [1, 1]} : vector<64x32xf32> to vector<8x32xf32>
    %383 = vector.extract_strided_slice %234 {offsets = [40, 0], sizes = [8, 32], strides = [1, 1]} : vector<64x32xf32> to vector<8x32xf32>
    %cst_73 = arith.constant dense<0.000000e+00> : vector<8x384xf32>
    %384 = tpu.matmul %380, %226, %cst_73 {dimension_numbers = #tpu.dot_dimension_numbers<[1], [0], [0], [1], [0, 0, 1, 1], [], []>} : vector<8x32xf32>, vector<32x384xf32>, vector<8x384xf32> -> vector<8x384xf32>
    %385 = vector.extract_strided_slice %384 {offsets = [0, 0], sizes = [8, 32], strides = [1, 1]} : vector<8x384xf32> to vector<8x32xf32>
    %386 = arith.addf %381, %385 : vector<8x32xf32>
    %387 = arith.negf %386 : vector<8x32xf32>
    %388 = math.exp %387 : vector<8x32xf32>
    %cst_74 = arith.constant 1.000000e+00 : f32
    %389 = vector.broadcast %cst_74 : f32 to vector<8x32xf32>
    %390 = arith.addf %389, %388 : vector<8x32xf32>
    %391 = arith.divf %389, %390 : vector<8x32xf32>
    %392 = vector.extract_strided_slice %384 {offsets = [0, 128], sizes = [8, 32], strides = [1, 1]} : vector<8x384xf32> to vector<8x32xf32>
    %393 = arith.addf %382, %392 : vector<8x32xf32>
    %394 = arith.negf %393 : vector<8x32xf32>
    %395 = math.exp %394 : vector<8x32xf32>
    %cst_75 = arith.constant 1.000000e+00 : f32
    %396 = vector.broadcast %cst_75 : f32 to vector<8x32xf32>
    %397 = arith.addf %396, %395 : vector<8x32xf32>
    %398 = arith.divf %396, %397 : vector<8x32xf32>
    %399 = vector.extract_strided_slice %384 {offsets = [0, 256], sizes = [8, 32], strides = [1, 1]} : vector<8x384xf32> to vector<8x32xf32>
    %400 = vector.broadcast %228 : vector<1x32xf32> to vector<8x32xf32>
    %401 = arith.addf %399, %400 : vector<8x32xf32>
    %402 = arith.mulf %391, %401 : vector<8x32xf32>
    %403 = arith.addf %383, %402 : vector<8x32xf32>
    %404 = math.tanh %403 : vector<8x32xf32>
    %cst_76 = arith.constant 1.000000e+00 : f32
    %405 = vector.broadcast %cst_76 : f32 to vector<8x32xf32>
    %406 = arith.subf %405, %398 : vector<8x32xf32>
    %407 = arith.mulf %406, %404 : vector<8x32xf32>
    %408 = arith.mulf %398, %380 : vector<8x32xf32>
    %409 = arith.addf %407, %408 : vector<8x32xf32>
    %410 = vector.extract_strided_slice %232 {offsets = [48, 0], sizes = [8, 32], strides = [1, 1]} : vector<64x32xf32> to vector<8x32xf32>
    %411 = vector.extract_strided_slice %233 {offsets = [48, 0], sizes = [8, 32], strides = [1, 1]} : vector<64x32xf32> to vector<8x32xf32>
    %412 = vector.extract_strided_slice %234 {offsets = [48, 0], sizes = [8, 32], strides = [1, 1]} : vector<64x32xf32> to vector<8x32xf32>
    %cst_77 = arith.constant dense<0.000000e+00> : vector<8x384xf32>
    %413 = tpu.matmul %409, %226, %cst_77 {dimension_numbers = #tpu.dot_dimension_numbers<[1], [0], [0], [1], [0, 0, 1, 1], [], []>} : vector<8x32xf32>, vector<32x384xf32>, vector<8x384xf32> -> vector<8x384xf32>
    %414 = vector.extract_strided_slice %413 {offsets = [0, 0], sizes = [8, 32], strides = [1, 1]} : vector<8x384xf32> to vector<8x32xf32>
    %415 = arith.addf %410, %414 : vector<8x32xf32>
    %416 = arith.negf %415 : vector<8x32xf32>
    %417 = math.exp %416 : vector<8x32xf32>
    %cst_78 = arith.constant 1.000000e+00 : f32
    %418 = vector.broadcast %cst_78 : f32 to vector<8x32xf32>
    %419 = arith.addf %418, %417 : vector<8x32xf32>
    %420 = arith.divf %418, %419 : vector<8x32xf32>
    %421 = vector.extract_strided_slice %413 {offsets = [0, 128], sizes = [8, 32], strides = [1, 1]} : vector<8x384xf32> to vector<8x32xf32>
    %422 = arith.addf %411, %421 : vector<8x32xf32>
    %423 = arith.negf %422 : vector<8x32xf32>
    %424 = math.exp %423 : vector<8x32xf32>
    %cst_79 = arith.constant 1.000000e+00 : f32
    %425 = vector.broadcast %cst_79 : f32 to vector<8x32xf32>
    %426 = arith.addf %425, %424 : vector<8x32xf32>
    %427 = arith.divf %425, %426 : vector<8x32xf32>
    %428 = vector.extract_strided_slice %413 {offsets = [0, 256], sizes = [8, 32], strides = [1, 1]} : vector<8x384xf32> to vector<8x32xf32>
    %429 = vector.broadcast %228 : vector<1x32xf32> to vector<8x32xf32>
    %430 = arith.addf %428, %429 : vector<8x32xf32>
    %431 = arith.mulf %420, %430 : vector<8x32xf32>
    %432 = arith.addf %412, %431 : vector<8x32xf32>
    %433 = math.tanh %432 : vector<8x32xf32>
    %cst_80 = arith.constant 1.000000e+00 : f32
    %434 = vector.broadcast %cst_80 : f32 to vector<8x32xf32>
    %435 = arith.subf %434, %427 : vector<8x32xf32>
    %436 = arith.mulf %435, %433 : vector<8x32xf32>
    %437 = arith.mulf %427, %409 : vector<8x32xf32>
    %438 = arith.addf %436, %437 : vector<8x32xf32>
    %439 = vector.extract_strided_slice %232 {offsets = [56, 0], sizes = [8, 32], strides = [1, 1]} : vector<64x32xf32> to vector<8x32xf32>
    %440 = vector.extract_strided_slice %233 {offsets = [56, 0], sizes = [8, 32], strides = [1, 1]} : vector<64x32xf32> to vector<8x32xf32>
    %441 = vector.extract_strided_slice %234 {offsets = [56, 0], sizes = [8, 32], strides = [1, 1]} : vector<64x32xf32> to vector<8x32xf32>
    %cst_81 = arith.constant dense<0.000000e+00> : vector<8x384xf32>
    %442 = tpu.matmul %438, %226, %cst_81 {dimension_numbers = #tpu.dot_dimension_numbers<[1], [0], [0], [1], [0, 0, 1, 1], [], []>} : vector<8x32xf32>, vector<32x384xf32>, vector<8x384xf32> -> vector<8x384xf32>
    %443 = vector.extract_strided_slice %442 {offsets = [0, 0], sizes = [8, 32], strides = [1, 1]} : vector<8x384xf32> to vector<8x32xf32>
    %444 = arith.addf %439, %443 : vector<8x32xf32>
    %445 = arith.negf %444 : vector<8x32xf32>
    %446 = math.exp %445 : vector<8x32xf32>
    %cst_82 = arith.constant 1.000000e+00 : f32
    %447 = vector.broadcast %cst_82 : f32 to vector<8x32xf32>
    %448 = arith.addf %447, %446 : vector<8x32xf32>
    %449 = arith.divf %447, %448 : vector<8x32xf32>
    %450 = vector.extract_strided_slice %442 {offsets = [0, 128], sizes = [8, 32], strides = [1, 1]} : vector<8x384xf32> to vector<8x32xf32>
    %451 = arith.addf %440, %450 : vector<8x32xf32>
    %452 = arith.negf %451 : vector<8x32xf32>
    %453 = math.exp %452 : vector<8x32xf32>
    %cst_83 = arith.constant 1.000000e+00 : f32
    %454 = vector.broadcast %cst_83 : f32 to vector<8x32xf32>
    %455 = arith.addf %454, %453 : vector<8x32xf32>
    %456 = arith.divf %454, %455 : vector<8x32xf32>
    %457 = vector.extract_strided_slice %442 {offsets = [0, 256], sizes = [8, 32], strides = [1, 1]} : vector<8x384xf32> to vector<8x32xf32>
    %458 = vector.broadcast %228 : vector<1x32xf32> to vector<8x32xf32>
    %459 = arith.addf %457, %458 : vector<8x32xf32>
    %460 = arith.mulf %449, %459 : vector<8x32xf32>
    %461 = arith.addf %441, %460 : vector<8x32xf32>
    %462 = math.tanh %461 : vector<8x32xf32>
    %cst_84 = arith.constant 1.000000e+00 : f32
    %463 = vector.broadcast %cst_84 : f32 to vector<8x32xf32>
    %464 = arith.subf %463, %456 : vector<8x32xf32>
    %465 = arith.mulf %464, %462 : vector<8x32xf32>
    %466 = arith.mulf %456, %438 : vector<8x32xf32>
    %467 = arith.addf %465, %466 : vector<8x32xf32>
    %468 = tpu.concatenate %264, %293, %322, %351, %380, %409, %438, %467 in 0 : vector<8x32xf32>, vector<8x32xf32>, vector<8x32xf32>, vector<8x32xf32>, vector<8x32xf32>, vector<8x32xf32>, vector<8x32xf32>, vector<8x32xf32> -> vector<64x32xf32>
    %c4 = arith.constant 4 : index
    %c0_85 = arith.constant 0 : index
    %c0_86 = arith.constant 0 : index
    %469 = vector.load %arg1[%c4, %c0_85, %c0_86] : memref<5x32x384xf32, #tpu.memory_space<vmem>>, vector<1x32x384xf32>
    %470 = vector.shape_cast %469 : vector<1x32x384xf32> to vector<32x384xf32>
    %471 = vector.extract_strided_slice %470 {offsets = [0, 0], sizes = [32, 16], strides = [1, 1]} : vector<32x384xf32> to vector<32x16xf32>
    %cst_87 = arith.constant dense<0.000000e+00> : vector<64x16xf32>
    %472 = tpu.matmul %468, %471, %cst_87 {dimension_numbers = #tpu.dot_dimension_numbers<[1], [0], [0], [1], [0, 0, 1, 1], [], []>} : vector<64x32xf32>, vector<32x16xf32>, vector<64x16xf32> -> vector<64x16xf32>
    %c4_88 = arith.constant 4 : index
    %c0_89 = arith.constant 0 : index
    %473 = vector.load %arg2[%c4_88, %c0_89] : memref<5x384xf32, #tpu.memory_space<vmem>>, vector<1x16xf32>
    %474 = vector.broadcast %473 : vector<1x16xf32> to vector<64x16xf32>
    %475 = arith.addf %472, %474 : vector<64x16xf32>
    %476 = vector.extract_strided_slice %475 {offsets = [0, 0], sizes = [8, 16], strides = [1, 1]} : vector<64x16xf32> to vector<8x16xf32>
    %477 = vector.extract_strided_slice %475 {offsets = [8, 0], sizes = [8, 16], strides = [1, 1]} : vector<64x16xf32> to vector<8x16xf32>
    %478 = vector.extract_strided_slice %475 {offsets = [16, 0], sizes = [8, 16], strides = [1, 1]} : vector<64x16xf32> to vector<8x16xf32>
    %479 = vector.extract_strided_slice %475 {offsets = [24, 0], sizes = [8, 16], strides = [1, 1]} : vector<64x16xf32> to vector<8x16xf32>
    %480 = vector.extract_strided_slice %475 {offsets = [32, 0], sizes = [8, 16], strides = [1, 1]} : vector<64x16xf32> to vector<8x16xf32>
    %481 = vector.extract_strided_slice %475 {offsets = [40, 0], sizes = [8, 16], strides = [1, 1]} : vector<64x16xf32> to vector<8x16xf32>
    %482 = vector.extract_strided_slice %475 {offsets = [48, 0], sizes = [8, 16], strides = [1, 1]} : vector<64x16xf32> to vector<8x16xf32>
    %483 = vector.extract_strided_slice %475 {offsets = [56, 0], sizes = [8, 16], strides = [1, 1]} : vector<64x16xf32> to vector<8x16xf32>
    %484 = tpu.concatenate %476, %477, %478, %479, %480, %481, %482, %483 in 1 : vector<8x16xf32>, vector<8x16xf32>, vector<8x16xf32>, vector<8x16xf32>, vector<8x16xf32>, vector<8x16xf32>, vector<8x16xf32>, vector<8x16xf32> -> vector<8x128xf32>
    %c0_90 = arith.constant 0 : index
    %c0_91 = arith.constant 0 : index
    %485 = vector.load %arg3[%c0_90, %c0_91] : memref<8x128xf32, #tpu.memory_space<vmem>>, vector<8x128xf32>
    tpu.vector_store %arg3[%c0_90, %c0_91], %484 {strides = array<i32>} : memref<8x128xf32, #tpu.memory_space<vmem>>, vector<8x128xf32>,
    return
  }
}

</mosaic_0001>

<bundles_post_ra>
// kernel: rnn_decoder_forward.1
= control target key start
LH: loop header
LB: loop body
LE: loop exit
PB: predicated region body
PF: predicated region fallthrough
CT: control target
= control target key end

     0   :  { %8 = vsyncpa [#allocation3], 0  ;;  %s4211_s12 = smov [#allocation2]   ;;  %s4749_s0 = inlined_call_operand.vmem [shape: f32[8,32], index: 0, kind: input, shape index: {}]   ;;  %s4750_s1 = inlined_call_operand.hbm [shape: f32[5,32,384], index: 1, kind: input, shape index: {}]   ;;  %s4751_s2 = inlined_call_operand.vmem [shape: f32[5,384], index: 2, kind: input, shape index: {}]   ;;  %s4752_s3 = inlined_call_operand.vmem [shape: f32[8,128], index: 3, kind: output, shape index: {}]  }
   0x1   :  { %s16_s13 = sshll.u32 %s4211_s12, 4  ;;  %s4187_s16 = scalar_lea.hbm %s4750_s1, 7680  ;;  %s17_s13 = int_to_ptr.vmem [resolvable:$true] %s16_s13 }
   0x2   :  { %p4188_p0 = scmp.ne.s32.totalorder %s4750_s1, %s4187_s16  ;;  %p4191_p1 = scmp.lt.u32.totalorder %s4187_s16, %s4750_s1 }
   0x4   :  { %p4193_p2 = pnand %p4191_p1, %p4188_p0 }
   0x6   :  { %4196 = shalt.err (!%p4193_p2)
}
   0x7   :  { %s4197_s21 = scalar_lea.vmem %s17_s13, 7680  ;;  %p4202_p4 = scmp.lt.s32.totalorder %s17_s13, %s17_s13 }
   0x8   :  { %p4198_p3 = scmp.ne.s32.totalorder %s17_s13, %s4197_s21  ;;  %p4203_p5 = scmp.lt.s32.totalorder %s4197_s21, %s4197_s21 }
   0xa   :  { %p4204_p6 = por %p4203_p5, %p4202_p4 }
   0xc   :  { %p4205_p7 = pnand %p4204_p6, %p4198_p3 }
   0xe   :  { %4208 = shalt.err (!%p4205_p7)
}
   0xf   :  { %s4212_s22 = smov 384   ;;  %s4213_s23 = smov 24  }
  0x10   :  { %22 = dma.hbm_to_vmem [thread:$0]  %s4750_s1, 7680, %s17_s13, [#allocation3], %s4212_s22, %s4212_s22, %s4213_s23  }
  0x11   :  { %4209 = dma.done.wait [#allocation3], 7680  }
  0x12   :  { %4210 = vsyncadd [#allocation3], 4294959616  ;;  %v4214_v0 = vmov 0.0   ;;  %v4215_v1 = vmov 0.0|0.0   ;;  %vm4216_vm0 = vmmov 0   ;;  %v30_v2 = vld [vmem:[#allocation2 + $0x8] sm:$0xff]  ;;  %v57_v39 = vlaneseq }
  0x13   :  { %140 = vmatprep.mubr.f32.mxu0 %v4214_v0  ;;  %3728 = vmatprep.subr.bf16.mxu1 %v4215_v1  ;;  %v33_v3 = vld [vmem:[#allocation2 + $0x20] sm:$0xff]  ;;  %v32_v6 = vld [vmem:[#allocation2 + $0x18] sm:$0xff]  ;;  %v39_v8 = vld [vmem:[#allocation2 + $0x50] sm:$0xff]  ;;  %vm72_vm1 = vcmask 261120   ;;  %s4217_s9 = smov 16   ;;  %s4218_s10 = smov 48  }
  0x14   :  { %3501 = vmatprep.mubr.msk.f32.mxu1 %vm4216_vm0, %v4214_v0  ;;  %v29_v4 = vld [vmem:[#allocation2] sm:$0xff]  ;;  %v3720_v5 = vpack.c.bf16 %v33_v3, %v30_v2  ;;  %v36_v7 = vld [vmem:[#allocation2 + $0x38] sm:$0xff]  ;;  %v35_v11 = vld [vmem:[#allocation2 + $0x30] sm:$0xff]  ;;  %v4304_v40 = vshrl.u32 %v57_v39, 7  ;;  %s4219_s11 = smov 32   ;;  %s4221_s12 = smov 80  }
  0x15   :  { %v3722_v9 = vpack.c.bf16 %v32_v6, %v29_v4  ;;  %v3724_v10 = vpack.c.bf16 %v39_v8, %v36_v7  ;;  %v38_v12 = vld [vmem:[#allocation2 + $0x48] sm:$0xff]  ;;  %v46_v14 = vld [vmem:[#allocation2 + $0x80] sm:$0xff]  ;;  %v45_v17 = vld [vmem:[#allocation2 + $0x78] sm:$0xff]  ;;  %s4222_s13 = smov 112   ;;  %s4223_s14 = smov 96   ;;  %vm3278_vm2 = vcmask 130048  }
  0x16   :  { %3721 = vmatprep.subr.bf16.mxu0 %v3720_v5  ;;  %v43_v13 = vld [vmem:[#allocation2 + $0x68] sm:$0xff]  ;;  %v3726_v15 = vpack.c.bf16 %v38_v12, %v35_v11  ;;  %v42_v16 = vld [vmem:[#allocation2 + $0x60] sm:$0xff]  ;;  %v49_v19 = vld [vmem:[#allocation2 + $0x98] sm:$0xff]  ;;  %v59_v41 = vsub.s32 0, %v4304_v40  ;;  %v63_v45 = vsub.s32 1, %v4304_v40  ;;  %v67_v62 = vsub.s32 2, %v4304_v40 }
  0x17   :  { %3723 = vmatpush1.bf16.msra.mxu0 %v3722_v9  ;;  %v4260_v18 = vpack.c.bf16 %v46_v14, %v43_v13  ;;  %v52_v20 = vld [vmem:[#allocation2 + $0xb0] sm:$0xff]  ;;  %v34_v22 = vld [vmem:[#allocation2 + $0x28] sm:$0xff]  ;;  %v37_v23 = vld [vmem:[#allocation2 + $0x40] sm:$0xff]  ;;  %v4265_v27 = vpack.c.bf16 %v45_v17, %v42_v16  ;;  %vm3281_vm3 = vcmask 392192   ;;  %vm3283_vm4 = vcmask 523264  }
  0x18   :  { %3725 = vmatprep.subr.bf16.mxu0 %v3724_v10  ;;  %v31_v21 = vld [vmem:[#allocation2 + $0x10] sm:$0xff]  ;;  %v40_v24 = vld [vmem:[#allocation2 + $0x58] sm:$0xff]  ;;  %v28_v26 = vld [vmem:[%s4749_s0] sm:$0xff]  ;;  %v4268_v28 = vpack.c.bf16 %v52_v20, %v49_v19  ;;  %vm3285_vm5 = vcmask 654336   ;;  %vm3287_vm6 = vcmask 785408   ;;  %vm3289_vm7 = vcmask 916480  }
  0x19   :  { %v3729_v25 = vpack.c.bf16 %v34_v22, %v31_v21  ;;  %v48_v29 = vld [vmem:[#allocation2 + $0x90] sm:$0xff]  ;;  %v51_v30 = vld [vmem:[#allocation2 + $0xa8] sm:$0xff]  ;;  %v3732_v31 = vpack.c.bf16 %v40_v24, %v37_v23  ;;  %v50_v36 = vld [vmem:[#allocation2 + $0xa0] sm:$0xff] }
  0x1a   :  { %v44_v32 = vld [vmem:[#allocation2 + $0x70] sm:$0xff]  ;;  %v47_v33 = vld [vmem:[#allocation2 + $0x88] sm:$0xff]  ;;  %v4273_v34 = vpack.c.bf16 %v51_v30, %v48_v29  ;;  %v53_v37 = vld [vmem:[#allocation2 + $0xb8] sm:$0xff] }
  0x1b   :  { %3727 = vmatpush1.bf16.msra.mxu0 %v3726_v15  ;;  %3730 = vmatpush3.bf16.msra.mxu1 %v3729_v25  ;;  %v4277_v35 = vpack.c.bf16 %v47_v33, %v44_v32  ;;  %v4283_v38 = vpack.c.bf16 %v53_v37, %v50_v36  ;;  %v54_v42 = vld [vmem:[%s4751_s2] ss:$8 sm:$0x7]  ;;  %v4325_v2 = vld [vmem:[%s4751_s2 + $0x1] ss:$0 sm:$0xff] }
  0x1c   :  { %3735 = vmatprep.subr.bf16.mxu0 %v4260_v18  ;;  %3731 = vmatprep.subr.bf16.mxu1 %v4215_v1  ;;  %v60_v46 = vrot.slane %v54_v42, %v59_v41  ;;  %v64_v48 = vrot.slane %v54_v42, %v63_v45  ;;  %v68_v4 = vrot.slane %v54_v42, %v67_v62 }
  0x1e   :  { %3297 = vmatmul.mubr.msk.f32.vlgmr.msra.gmra.mrb[0].mxu0 %vm72_vm1, %v28_v26 }
  0x1f   :  { %3737 = vmatpush1.bf16.msra.mxu0 %v4265_v27  ;;  %284 = vmatprep.mubr.f32.mxu0 %v4214_v0 }
  0x20   :  { %3739 = vmatprep.subr.bf16.mxu0 %v4268_v28  ;;  %3733 = vmatpush3.bf16.msra.mxu1 %v3732_v31 }
  0x21   :  { %3742 = vmatprep.subr.bf16.mxu1 %v4215_v1 }
  0x23   :  { %3741 = vmatpush1.bf16.msra.mxu0 %v4273_v34  ;;  %3502 = vmatmul.mubr.msk.f32.vlgmr.msra.gmra.mrb[0].mxu1 %vm72_vm1, %v28_v26 }
  0x24   :  { %3744 = vmatpush3.bf16.msra.mxu1 %v4277_v35  ;;  %3512 = vmatprep.mubr.msk.f32.mxu1 %vm4216_vm0, %v4214_v0 }
  0x25   :  { %3745 = vmatprep.subr.bf16.mxu1 %v4215_v1  ;;  %3749 = vmatprep.subr.bf16.mxu0 %v4260_v18 }
  0x26   :  { %285 = vmatmul.mubr.f32.vlgmr.msra.gmra.mrb[2].mxu0 %v4214_v0 }
  0x27   :  { %3751 = vmatpush1.bf16.msra.mxu0 %v4265_v27  ;;  %450 = vmatprep.mubr.f32.mxu0 %v4214_v0 }
  0x28   :  { %3747 = vmatpush3.bf16.msra.mxu1 %v4283_v38  ;;  %3753 = vmatprep.subr.bf16.mxu0 %v4268_v28 }
  0x29   :  { %3756 = vmatprep.subr.bf16.mxu1 %v4215_v1 }
  0x2b   :  { %3513 = vmatmul.mubr.f32.vlgmr.msra.gmra.mrb[2].mxu1 %v4214_v0  ;;  %3755 = vmatpush1.bf16.msra.mxu0 %v4273_v34 }
  0x2c   :  { %3758 = vmatpush3.bf16.msra.mxu1 %v4277_v35  ;;  %3523 = vmatprep.mubr.msk.f32.mxu1 %vm4216_vm0, %v4214_v0 }
  0x2d   :  { %3759 = vmatprep.subr.bf16.mxu1 %v4215_v1  ;;  %3763 = vmatprep.subr.bf16.mxu0 %v4260_v18 }
  0x30   :  { %3761 = vmatpush3.bf16.msra.mxu1 %v4283_v38 }
  0x31   :  { %3770 = vmatprep.subr.bf16.mxu1 %v4215_v1 }
  0xf1   :  { %v142_v43 = vpop.f32.mrb[0].mxu0 }
  0xf2   :  { %v144_v44 = vpop.f32.mrb[1].mxu0  ;;  %v4315_v50 = vadd.f32 %v142_v43, %v60_v46 }
  0xf3   :  { %v4318_v54 = vadd.f32 %v144_v44, %v64_v48 }
  0xf6   :  { %v213_v47 = vpop.f32.mrb[0].mxu1 }
  0xf7   :  { %v3503_v49 = vpop.f32.mrb[1].mxu1  ;;  %v4330_v7 = vadd.f32 %v213_v47, %v68_v4 }
  0xf9   :  { %v286_v51 = vpop.f32.mrb[2].mxu0 }
  0xfa   :  { %v361_v52 = vadd.f32 %v286_v51, %v4315_v50  ;;  %v288_v53 = vpop.f32.mrb[3].mxu0 }
  0xfb   :  { %v368_v56 = vadd.f32 %v288_v53, %v4318_v54 }
  0xfc   :  { %v3299_v55 = vmul.f32 -1.442695, %v361_v52 }
  0xfd   :  { %v3300_v59 = vmul.f32 -1.442695, %v368_v56 }
  0xfe   :  { %4027 = vpow2.f32 %v3299_v55  ;;  %v357_v57 = vpop.f32.mrb[2].mxu1 }
  0xff   :  { %v3514_v58 = vpop.f32.mrb[3].mxu1  ;;  %4029 = vpow2.f32 %v3300_v59  ;;  %v375_v5 = vadd.f32 %v357_v57, %v4325_v2 }
 0x108   :  { %v4028_v60 = vpop.eup %4027 }
 0x109   :  { %v365_v61 = vadd.f32 1.0, %v4028_v60  ;;  %v4030_v63 = vpop.eup %4029 }
 0x10a   :  { %v372_v3 = vadd.f32 1.0, %v4030_v63 }
 0x10b   :  { %4031 = vrcp.f32 %v365_v61 }
 0x10c   :  { %4033 = vrcp.f32 %v372_v3 }
 0x115   :  { %v4032_v6 = vpop.eup %4031 }
 0x116   :  { %v376_v8 = vmul.f32 %v4032_v6, %v375_v5  ;;  %v4034_v10 = vpop.eup %4033 }
 0x117   :  { %v379_v11 = vsub.f32 1.0, %v4034_v10  ;;  %v381_v14 = vmul.f32 0.0, %v4034_v10 }
 0x118   :  { %v377_v9 = vadd.f32 %v376_v8, %v4330_v7 }
 0x11a   :  { %4035 = vtanh.f32 %v377_v9 }
 0x124   :  { %v4036_v12 = vpop.eup %4035 }
 0x125   :  { %v380_v13 = vmul.f32 %v4036_v12, %v379_v11 }
 0x127   :  { %v4333_v15 = vadd.f32 %v381_v14, %v380_v13 }
 0x129   :  { %3301 = vmatmul.mubr.msk.f32.vlgmr.msra.gmra.mrb[4].mxu0 %vm72_vm1, %v4333_v15  ;;  %3524 = vmatmul.mubr.msk.f32.vlgmr.msra.gmra.mrb[4].mxu1 %vm72_vm1, %v4333_v15 }
 0x12a   :  { %3765 = vmatpush1.bf16.msra.mxu0 %v4265_v27  ;;  %3772 = vmatpush3.bf16.msra.mxu1 %v4277_v35 }
 0x12b   :  { %3767 = vmatprep.subr.bf16.mxu0 %v4268_v28  ;;  %3773 = vmatprep.subr.bf16.mxu1 %v4215_v1 }
 0x12c   :  { %616 = vmatprep.mubr.f32.mxu0 %v4214_v0  ;;  %3534 = vmatprep.mubr.msk.f32.mxu1 %vm4216_vm0, %v4214_v0 }
 0x12e   :  { %3769 = vmatpush1.bf16.msra.mxu0 %v4273_v34  ;;  %3775 = vmatpush3.bf16.msra.mxu1 %v4283_v38 }
 0x12f   :  { %3777 = vmatprep.subr.bf16.mxu0 %v4260_v18  ;;  %3784 = vmatprep.subr.bf16.mxu1 %v4215_v1 }
 0x1fc   :  { %v452_v16 = vpop.f32.mrb[4].mxu0  ;;  %v523_v17 = vpop.f32.mrb[4].mxu1 }
 0x1fd   :  { %v527_v19 = vadd.f32 %v452_v16, %v4315_v50  ;;  %v454_v20 = vpop.f32.mrb[5].mxu0  ;;  %v3525_v21 = vpop.f32.mrb[5].mxu1  ;;  %v541_v31 = vadd.f32 %v523_v17, %v4325_v2 }
 0x1fe   :  { %v534_v23 = vadd.f32 %v454_v20, %v4318_v54 }
 0x1ff   :  { %v3303_v22 = vmul.f32 -1.442695, %v527_v19 }
 0x200   :  { %v3304_v24 = vmul.f32 -1.442695, %v534_v23 }
 0x201   :  { %4037 = vpow2.f32 %v3303_v22 }
 0x202   :  { %4039 = vpow2.f32 %v3304_v24 }
 0x20b   :  { %v4038_v25 = vpop.eup %4037 }
 0x20c   :  { %v531_v26 = vadd.f32 1.0, %v4038_v25  ;;  %v4040_v29 = vpop.eup %4039 }
 0x20d   :  { %v538_v30 = vadd.f32 1.0, %v4040_v29 }
 0x20e   :  { %4041 = vrcp.f32 %v531_v26 }
 0x20f   :  { %4043 = vrcp.f32 %v538_v30 }
 0x218   :  { %v4042_v32 = vpop.eup %4041 }
 0x219   :  { %v542_v33 = vmul.f32 %v4042_v32, %v541_v31  ;;  %v4044_v37 = vpop.eup %4043 }
 0x21a   :  { %v545_v39 = vsub.f32 1.0, %v4044_v37  ;;  %v547_v44 = vmul.f32 %v4044_v37, %v4333_v15 }
 0x21b   :  { %v543_v36 = vadd.f32 %v542_v33, %v4330_v7 }
 0x21d   :  { %4045 = vtanh.f32 %v543_v36 }
 0x227   :  { %v4046_v42 = vpop.eup %4045 }
 0x228   :  { %v546_v43 = vmul.f32 %v4046_v42, %v545_v39 }
 0x22a   :  { %v4355_v46 = vadd.f32 %v547_v44, %v546_v43 }
 0x22c   :  { %3305 = vmatmul.mubr.msk.f32.vlgmr.msra.gmra.mrb[6].mxu0 %vm72_vm1, %v4355_v46  ;;  %3535 = vmatmul.mubr.msk.f32.vlgmr.msra.gmra.mrb[6].mxu1 %vm72_vm1, %v4355_v46 }
 0x22d   :  { %3779 = vmatpush1.bf16.msra.mxu0 %v4265_v27  ;;  %3786 = vmatpush3.bf16.msra.mxu1 %v4277_v35 }
 0x22e   :  { %3781 = vmatprep.subr.bf16.mxu0 %v4268_v28  ;;  %3787 = vmatprep.subr.bf16.mxu1 %v4215_v1 }
 0x22f   :  { %782 = vmatprep.mubr.f32.mxu0 %v4214_v0  ;;  %3545 = vmatprep.mubr.msk.f32.mxu1 %vm4216_vm0, %v4214_v0 }
 0x231   :  { %3783 = vmatpush1.bf16.msra.mxu0 %v4273_v34  ;;  %3789 = vmatpush3.bf16.msra.mxu1 %v4283_v38 }
 0x232   :  { %3791 = vmatprep.subr.bf16.mxu0 %v4260_v18  ;;  %3798 = vmatprep.subr.bf16.mxu1 %v4215_v1 }
 0x2ff   :  { %v618_v47 = vpop.f32.mrb[6].mxu0  ;;  %v689_v48 = vpop.f32.mrb[6].mxu1 }
 0x300   :  { %v693_v49 = vadd.f32 %v618_v47, %v4315_v50  ;;  %v620_v51 = vpop.f32.mrb[7].mxu0  ;;  %v3536_v52 = vpop.f32.mrb[7].mxu1  ;;  %v707_v61 = vadd.f32 %v689_v48, %v4325_v2 }
 0x301   :  { %v700_v55 = vadd.f32 %v620_v51, %v4318_v54 }
 0x302   :  { %v3307_v53 = vmul.f32 -1.442695, %v693_v49 }
 0x303   :  { %v3308_v56 = vmul.f32 -1.442695, %v700_v55 }
 0x304   :  { %4047 = vpow2.f32 %v3307_v53 }
 0x305   :  { %4049 = vpow2.f32 %v3308_v56 }
 0x30e   :  { %v4048_v57 = vpop.eup %4047 }
 0x30f   :  { %v697_v58 = vadd.f32 1.0, %v4048_v57  ;;  %v4050_v59 = vpop.eup %4049 }
 0x310   :  { %v704_v60 = vadd.f32 1.0, %v4050_v59 }
 0x311   :  { %4051 = vrcp.f32 %v697_v58 }
 0x312   :  { %4053 = vrcp.f32 %v704_v60 }
 0x31b   :  { %v4052_v63 = vpop.eup %4051 }
 0x31c   :  { %v708_v3 = vmul.f32 %v4052_v63, %v707_v61  ;;  %v4054_v5 = vpop.eup %4053 }
 0x31d   :  { %v711_v6 = vsub.f32 1.0, %v4054_v5  ;;  %v713_v10 = vmul.f32 %v4054_v5, %v4355_v46 }
 0x31e   :  { %v709_v4 = vadd.f32 %v708_v3, %v4330_v7 }
 0x320   :  { %4055 = vtanh.f32 %v709_v4 }
 0x32a   :  { %v4056_v8 = vpop.eup %4055 }
 0x32b   :  { %v712_v9 = vmul.f32 %v4056_v8, %v711_v6 }
 0x32d   :  { %v4377_v11 = vadd.f32 %v713_v10, %v712_v9 }
 0x32f   :  { %3309 = vmatmul.mubr.msk.f32.vlgmr.msra.gmra.mrb[8].mxu0 %vm72_vm1, %v4377_v11  ;;  %3546 = vmatmul.mubr.msk.f32.vlgmr.msra.gmra.mrb[8].mxu1 %vm72_vm1, %v4377_v11 }
 0x330   :  { %3793 = vmatpush1.bf16.msra.mxu0 %v4265_v27  ;;  %3800 = vmatpush3.bf16.msra.mxu1 %v4277_v35 }
 0x331   :  { %3795 = vmatprep.subr.bf16.mxu0 %v4268_v28  ;;  %3801 = vmatprep.subr.bf16.mxu1 %v4215_v1 }
 0x332   :  { %948 = vmatprep.mubr.f32.mxu0 %v4214_v0  ;;  %3556 = vmatprep.mubr.msk.f32.mxu1 %vm4216_vm0, %v4214_v0 }
 0x334   :  { %3797 = vmatpush1.bf16.msra.mxu0 %v4273_v34  ;;  %3803 = vmatpush3.bf16.msra.mxu1 %v4283_v38 }
 0x335   :  { %3805 = vmatprep.subr.bf16.mxu0 %v4260_v18  ;;  %3812 = vmatprep.subr.bf16.mxu1 %v4215_v1 }
 0x402   :  { %v784_v12 = vpop.f32.mrb[8].mxu0  ;;  %v855_v13 = vpop.f32.mrb[8].mxu1 }
 0x403   :  { %v859_v14 = vadd.f32 %v784_v12, %v4315_v50  ;;  %v786_v16 = vpop.f32.mrb[9].mxu0  ;;  %v3547_v17 = vpop.f32.mrb[9].mxu1  ;;  %v873_v26 = vadd.f32 %v855_v13, %v4325_v2 }
 0x404   :  { %v866_v20 = vadd.f32 %v786_v16, %v4318_v54 }
 0x405   :  { %v3311_v19 = vmul.f32 -1.442695, %v859_v14 }
 0x406   :  { %v3312_v21 = vmul.f32 -1.442695, %v866_v20 }
 0x407   :  { %4057 = vpow2.f32 %v3311_v19 }
 0x408   :  { %4059 = vpow2.f32 %v3312_v21 }
 0x411   :  { %v4058_v22 = vpop.eup %4057 }
 0x412   :  { %v863_v23 = vadd.f32 1.0, %v4058_v22  ;;  %v4060_v24 = vpop.eup %4059 }
 0x413   :  { %v870_v25 = vadd.f32 1.0, %v4060_v24 }
 0x414   :  { %4061 = vrcp.f32 %v863_v23 }
 0x415   :  { %4063 = vrcp.f32 %v870_v25 }
 0x41e   :  { %v4062_v29 = vpop.eup %4061 }
 0x41f   :  { %v874_v30 = vmul.f32 %v4062_v29, %v873_v26  ;;  %v4064_v32 = vpop.eup %4063 }
 0x420   :  { %v877_v33 = vsub.f32 1.0, %v4064_v32  ;;  %v879_v39 = vmul.f32 %v4064_v32, %v4377_v11 }
 0x421   :  { %v875_v31 = vadd.f32 %v874_v30, %v4330_v7 }
 0x423   :  { %4065 = vtanh.f32 %v875_v31 }
 0x42d   :  { %v4066_v36 = vpop.eup %4065 }
 0x42e   :  { %v878_v37 = vmul.f32 %v4066_v36, %v877_v33 }
 0x430   :  { %v4399_v42 = vadd.f32 %v879_v39, %v878_v37  ;;  %v1547_v39 = vld [vmem:[#allocation2 + $0xc8] sm:$0xff] }
 0x432   :  { %3313 = vmatmul.mubr.msk.f32.vlgmr.msra.gmra.mrb[10].mxu0 %vm72_vm1, %v4399_v42  ;;  %3557 = vmatmul.mubr.msk.f32.vlgmr.msra.gmra.mrb[10].mxu1 %vm72_vm1, %v4399_v42 }
 0x433   :  { %3807 = vmatpush1.bf16.msra.mxu0 %v4265_v27  ;;  %3814 = vmatpush3.bf16.msra.mxu1 %v4277_v35 }
 0x434   :  { %3809 = vmatprep.subr.bf16.mxu0 %v4268_v28  ;;  %3815 = vmatprep.subr.bf16.mxu1 %v4215_v1 }
 0x435   :  { %1114 = vmatprep.mubr.f32.mxu0 %v4214_v0  ;;  %3567 = vmatprep.mubr.msk.f32.mxu1 %vm4216_vm0, %v4214_v0 }
 0x437   :  { %3811 = vmatpush1.bf16.msra.mxu0 %v4273_v34  ;;  %3817 = vmatpush3.bf16.msra.mxu1 %v4283_v38 }
 0x438   :  { %3819 = vmatprep.subr.bf16.mxu0 %v4260_v18  ;;  %3826 = vmatprep.subr.bf16.mxu1 %v4215_v1 }
 0x505   :  { %v950_v43 = vpop.f32.mrb[10].mxu0  ;;  %v1021_v44 = vpop.f32.mrb[10].mxu1 }
 0x506   :  { %v1025_v47 = vadd.f32 %v950_v43, %v4315_v50  ;;  %v952_v48 = vpop.f32.mrb[11].mxu0  ;;  %v3558_v49 = vpop.f32.mrb[11].mxu1  ;;  %v1039_v59 = vadd.f32 %v1021_v44, %v4325_v2  ;;  %v1550_v43 = vld [vmem:[#allocation2 + $0xe0] sm:$0xff]  ;;  %v1548_v44 = vld [vmem:[#allocation2 + $0xd0] sm:$0xff] }
 0x507   :  { %v1032_v52 = vadd.f32 %v952_v48, %v4318_v54 }
 0x508   :  { %v3315_v51 = vmul.f32 -1.442695, %v1025_v47  ;;  %v3846_v47 = vpack.c.bf16 %v1550_v43, %v1547_v39  ;;  %v1567_v39 = vld [vmem:[#allocation2 + $0x160] sm:$0xff] }
 0x509   :  { %v3316_v53 = vmul.f32 -1.442695, %v1032_v52 }
 0x50a   :  { %4067 = vpow2.f32 %v3315_v51 }
 0x50b   :  { %4069 = vpow2.f32 %v3316_v53 }
 0x514   :  { %v4068_v55 = vpop.eup %4067 }
 0x515   :  { %v1029_v56 = vadd.f32 1.0, %v4068_v55  ;;  %v4070_v57 = vpop.eup %4069 }
 0x516   :  { %v1036_v58 = vadd.f32 1.0, %v4070_v57 }
 0x517   :  { %4071 = vrcp.f32 %v1029_v56 }
 0x518   :  { %4073 = vrcp.f32 %v1036_v58 }
 0x521   :  { %v4072_v60 = vpop.eup %4071 }
 0x522   :  { %v1040_v61 = vmul.f32 %v4072_v60, %v1039_v59  ;;  %v4074_v3 = vpop.eup %4073 }
 0x523   :  { %v1043_v4 = vsub.f32 1.0, %v4074_v3  ;;  %v1045_v8 = vmul.f32 %v4074_v3, %v4399_v42 }
 0x524   :  { %v1041_v63 = vadd.f32 %v1040_v61, %v4330_v7 }
 0x526   :  { %4075 = vtanh.f32 %v1041_v63 }
 0x530   :  { %v4076_v5 = vpop.eup %4075 }
 0x531   :  { %v1044_v6 = vmul.f32 %v4076_v5, %v1043_v4  ;;  %v1546_v5 = vld [vmem:[#allocation2 + $0xc0] sm:$0xff] }
 0x533   :  { %v4421_v9 = vadd.f32 %v1045_v8, %v1044_v6  ;;  %v1549_v6 = vld [vmem:[#allocation2 + $0xd8] sm:$0xff] }
 0x535   :  { %3317 = vmatmul.mubr.msk.f32.vlgmr.msra.gmra.mrb[12].mxu0 %vm72_vm1, %v4421_v9  ;;  %3568 = vmatmul.mubr.msk.f32.vlgmr.msra.gmra.mrb[12].mxu1 %vm72_vm1, %v4421_v9 }
 0x536   :  { %3821 = vmatpush1.bf16.msra.mxu0 %v4265_v27  ;;  %3828 = vmatpush3.bf16.msra.mxu1 %v4277_v35 }
 0x537   :  { %3823 = vmatprep.subr.bf16.mxu0 %v4268_v28  ;;  %3829 = vmatprep.subr.bf16.mxu1 %v4215_v1 }
 0x538   :  { %1280 = vmatprep.mubr.f32.mxu0 %v4214_v0  ;;  %3578 = vmatprep.mubr.msk.f32.mxu1 %vm4216_vm0, %v4214_v0 }
 0x53a   :  { %3825 = vmatpush1.bf16.msra.mxu0 %v4273_v34  ;;  %3831 = vmatpush3.bf16.msra.mxu1 %v4283_v38 }
 0x53b   :  { %3833 = vmatprep.subr.bf16.mxu0 %v4260_v18  ;;  %3840 = vmatprep.subr.bf16.mxu1 %v4215_v1 }
 0x608   :  { %v1116_v10 = vpop.f32.mrb[12].mxu0  ;;  %v1187_v12 = vpop.f32.mrb[12].mxu1 }
 0x609   :  { %v1191_v13 = vadd.f32 %v1116_v10, %v4315_v50  ;;  %v1118_v14 = vpop.f32.mrb[13].mxu0  ;;  %v3569_v16 = vpop.f32.mrb[13].mxu1  ;;  %v1205_v18 = vadd.f32 %v1187_v12, %v4325_v2  ;;  %v1553_v10 = vld [vmem:[#allocation2 + $0xf8] sm:$0xff]  ;;  %v1556_v12 = vld [vmem:[#allocation2 + $0x110] sm:$0xff] }
 0x60a   :  { %v1198_v19 = vadd.f32 %v1118_v14, %v4318_v54  ;;  %v1554_v16 = vld [vmem:[#allocation2 + $0x100] sm:$0xff] }
 0x60b   :  { %v3319_v17 = vmul.f32 -1.442695, %v1191_v13 }
 0x60c   :  { %v3320_v20 = vmul.f32 -1.442695, %v1198_v19  ;;  %v3848_v19 = vpack.c.bf16 %v1549_v6, %v1546_v5 }
 0x60d   :  { %4077 = vpow2.f32 %v3319_v17  ;;  %v1557_v17 = vld [vmem:[#allocation2 + $0x118] sm:$0xff] }
 0x60e   :  { %4079 = vpow2.f32 %v3320_v20 }
 0x617   :  { %v4078_v21 = vpop.eup %4077 }
 0x618   :  { %v1195_v22 = vadd.f32 1.0, %v4078_v21  ;;  %v4080_v23 = vpop.eup %4079  ;;  %v3850_v21 = vpack.c.bf16 %v1556_v12, %v1553_v10 }
 0x619   :  { %v1202_v24 = vadd.f32 1.0, %v4080_v23  ;;  %v1555_v23 = vld [vmem:[#allocation2 + $0x108] sm:$0xff] }
 0x61a   :  { %4081 = vrcp.f32 %v1195_v22  ;;  %v1552_v22 = vld [vmem:[#allocation2 + $0xf0] sm:$0xff] }
 0x61b   :  { %4083 = vrcp.f32 %v1202_v24  ;;  %v3858_v24 = vpack.c.bf16 %v1557_v17, %v1554_v16 }
 0x624   :  { %v4082_v25 = vpop.eup %4081 }
 0x625   :  { %v1206_v26 = vmul.f32 %v4082_v25, %v1205_v18  ;;  %v4084_v30 = vpop.eup %4083  ;;  %v3852_v18 = vpack.c.bf16 %v1555_v23, %v1552_v22  ;;  %v1562_v25 = vld [vmem:[#allocation2 + $0x138] sm:$0xff] }
 0x626   :  { %v1209_v31 = vsub.f32 1.0, %v4084_v30  ;;  %v1211_v36 = vmul.f32 %v4084_v30, %v4421_v9 }
 0x627   :  { %v1207_v29 = vadd.f32 %v1206_v26, %v4330_v7  ;;  %v1566_v26 = vld [vmem:[#allocation2 + $0x158] sm:$0xff] }
 0x629   :  { %4085 = vtanh.f32 %v1207_v29 }
 0x633   :  { %v4086_v32 = vpop.eup %4085 }
 0x634   :  { %v1210_v33 = vmul.f32 %v4086_v32, %v1209_v31  ;;  %v1565_v31 = vld [vmem:[#allocation2 + $0x150] sm:$0xff]  ;;  %v1568_v32 = vld [vmem:[#allocation2 + $0x168] sm:$0xff] }
 0x636   :  { %v4443_v37 = vadd.f32 %v1211_v36, %v1210_v33  ;;  %v4514_v33 = vpack.c.bf16 %v1568_v32, %v1565_v31  ;;  %v1561_v36 = vld [vmem:[#allocation2 + $0x130] sm:$0xff] }
 0x638   :  { %3321 = vmatmul.mubr.msk.f32.vlgmr.msra.gmra.mrb[14].mxu0 %vm72_vm1, %v4443_v37  ;;  %3579 = vmatmul.mubr.msk.f32.vlgmr.msra.gmra.mrb[14].mxu1 %vm72_vm1, %v4443_v37 }
 0x639   :  { %3835 = vmatpush1.bf16.msra.mxu0 %v4265_v27  ;;  %3842 = vmatpush3.bf16.msra.mxu1 %v4277_v35  ;;  %v1551_v27 = vld [vmem:[#allocation2 + $0xe8] sm:$0xff] }
 0x63a   :  { %3837 = vmatprep.subr.bf16.mxu0 %v4268_v28  ;;  %3843 = vmatprep.subr.bf16.mxu1 %v4215_v1  ;;  %v3854_v48 = vpack.c.bf16 %v1551_v27, %v1548_v44  ;;  %v1570_v44 = vld [vmem:[#allocation2 + $0x178] sm:$0xff] }
 0x63b   :  { %1446 = vmatprep.mubr.f32.mxu0 %v4214_v0  ;;  %3589 = vmatprep.mubr.msk.f32.mxu1 %vm4216_vm0, %v4214_v0 }
 0x63d   :  { %3839 = vmatpush1.bf16.msra.mxu0 %v4273_v34  ;;  %3845 = vmatpush3.bf16.msra.mxu1 %v4283_v38 }
 0x63e   :  { %3847 = vmatprep.subr.bf16.mxu0 %v3846_v47  ;;  %3855 = vmatprep.subr.bf16.mxu1 %v3854_v48  ;;  %v4522_v47 = vpack.c.bf16 %v1570_v44, %v1567_v39 }
 0x70b   :  { %v1282_v28 = vpop.f32.mrb[14].mxu0  ;;  %v1353_v35 = vpop.f32.mrb[14].mxu1 }
 0x70c   :  { %v1357_v49 = vadd.f32 %v1282_v28, %v4315_v50  ;;  %v1284_v51 = vpop.f32.mrb[15].mxu0  ;;  %v3580_v52 = vpop.f32.mrb[15].mxu1  ;;  %v1371_v59 = vadd.f32 %v1353_v35, %v4325_v2 }
 0x70d   :  { %v1364_v55 = vadd.f32 %v1284_v51, %v4318_v54 }
 0x70e   :  { %v3323_v53 = vmul.f32 -1.442695, %v1357_v49 }
 0x70f   :  { %v3324_v34 = vmul.f32 -1.442695, %v1364_v55 }
 0x710   :  { %4087 = vpow2.f32 %v3323_v53 }
 0x711   :  { %4089 = vpow2.f32 %v3324_v34 }
 0x71a   :  { %v4088_v38 = vpop.eup %4087 }
 0x71b   :  { %v1361_v56 = vadd.f32 1.0, %v4088_v38  ;;  %v4090_v57 = vpop.eup %4089 }
 0x71c   :  { %v1368_v58 = vadd.f32 1.0, %v4090_v57 }
 0x71d   :  { %4091 = vrcp.f32 %v1361_v56 }
 0x71e   :  { %4093 = vrcp.f32 %v1368_v58 }
 0x727   :  { %v4092_v60 = vpop.eup %4091 }
 0x728   :  { %v1372_v61 = vmul.f32 %v4092_v60, %v1371_v59  ;;  %v4094_v3 = vpop.eup %4093 }
 0x729   :  { %v1375_v4 = vsub.f32 1.0, %v4094_v3  ;;  %v1377_v14 = vmul.f32 %v4094_v3, %v4443_v37 }
 0x72a   :  { %v1373_v63 = vadd.f32 %v1372_v61, %v4330_v7 }
 0x72c   :  { %4095 = vtanh.f32 %v1373_v63 }
 0x736   :  { %v4096_v8 = vpop.eup %4095 }
 0x737   :  { %v1376_v13 = vmul.f32 %v4096_v8, %v1375_v4 }
 0x739   :  { %v4463_v20 = vadd.f32 %v1377_v14, %v1376_v13 }
 0x73b   :  { %3325 = vmatmul.mubr.msk.f32.vlgmr.msra.gmra.mrb[16].mxu0 %vm72_vm1, %v4463_v20  ;;  %3590 = vmatmul.mubr.msk.f32.vlgmr.msra.gmra.mrb[16].mxu1 %vm72_vm1, %v4463_v20 }
 0x73c   :  { %3849 = vmatpush1.bf16.msra.mxu0 %v3848_v19  ;;  %3857 = vmatpush3.bf16.msra.mxu1 %v3854_v48 }
 0x73d   :  { %3600 = vmatprep.mubr.msk.f32.mxu1 %vm72_vm1, %v4333_v15  ;;  %3851 = vmatprep.subr.bf16.mxu0 %v3850_v21 }
 0x73e   :  { %3859 = vmatprep.subr.bf16.mxu1 %v3858_v24  ;;  %1657 = vmatprep.mubr.f32.mxu0 %v4214_v0 }
 0x740   :  { %3853 = vmatpush1.bf16.msra.mxu0 %v3852_v18  ;;  %3861 = vmatpush3.bf16.msra.mxu1 %v3858_v24 }
 0x741   :  { %3870 = vmatprep.subr.bf16.mxu1 %v4215_v1 }
 0x743   :  { %3330 = vmatmul.mubr.msk.f32.vlgmr.msra.gmra.mrb[18].mxu0 %vm72_vm1, %v4333_v15  ;;  %3601 = vmatmul.mubr.msk.f32.vlgmr.msra.gmra.mrb[18].mxu1 %vm72_vm1, %v4355_v46  ;;  %v1560_v15 = vld [vmem:[#allocation2 + $0x128] sm:$0xff] }
 0x744   :  { %3603 = vmatprep.mubr.msk.f32.mxu1 %vm72_vm1, %v4377_v11  ;;  %1663 = vmatprep.mubr.f32.mxu0 %v4214_v0 }
 0x747   :  { %3331 = vmatmul.mubr.msk.f32.gmra.mrb[20].mxu0 %vm72_vm1, %v4355_v46  ;;  %3604 = vmatmul.mubr.msk.f32.gmra.mrb[20].mxu1 %vm72_vm1, %v4399_v42  ;;  %v1563_v46 = vld [vmem:[#allocation2 + $0x140] sm:$0xff] }
 0x748   :  { %3606 = vmatprep.mubr.msk.f32.mxu1 %vm72_vm1, %v4421_v9  ;;  %1669 = vmatprep.mubr.f32.mxu0 %v4214_v0 }
 0x74b   :  { %3332 = vmatmul.mubr.msk.f32.gmra.mrb[22].mxu0 %vm72_vm1, %v4377_v11  ;;  %3607 = vmatmul.mubr.msk.f32.gmra.mrb[22].mxu1 %vm72_vm1, %v4443_v37  ;;  %v1559_v11 = vld [vmem:[#allocation2 + $0x120] sm:$0xff] }
 0x74c   :  { %3609 = vmatprep.mubr.msk.f32.mxu1 %vm72_vm1, %v4463_v20  ;;  %1675 = vmatprep.mubr.f32.mxu0 %v4214_v0  ;;  %v4508_v29 = vpack.c.bf16 %v1562_v25, %v1559_v11 }
 0x74f   :  { %3333 = vmatmul.mubr.msk.f32.gmra.mrb[24].mxu0 %vm72_vm1, %v4399_v42  ;;  %v4506_v42 = vpack.c.bf16 %v1563_v46, %v1560_v15 }
 0x750   :  { %1681 = vmatprep.mubr.f32.mxu0 %v4214_v0 }
 0x751   :  { %3863 = vmatprep.subr.bf16.mxu0 %v4506_v42 }
 0x752   :  { %3865 = vmatpush1.bf16.msra.mxu0 %v4508_v29 }
 0x753   :  { %3334 = vmatmul.mubr.msk.f32.gmra.mrb[26].mxu0 %vm72_vm1, %v4421_v9  ;;  %v1569_v9 = vld [vmem:[#allocation2 + $0x170] sm:$0xff] }
 0x754   :  { %1687 = vmatprep.mubr.f32.mxu0 %v4214_v0  ;;  %v4510_v30 = vpack.c.bf16 %v1569_v9, %v1566_v26 }
 0x756   :  { %3867 = vmatprep.subr.bf16.mxu0 %v4510_v30 }
 0x757   :  { %3335 = vmatmul.mubr.msk.f32.gmra.mrb[28].mxu0 %vm72_vm1, %v4443_v37  ;;  %v1564_v37 = vld [vmem:[#allocation2 + $0x148] sm:$0xff] }
 0x758   :  { %1693 = vmatprep.mubr.f32.mxu0 %v4214_v0  ;;  %3869 = vmatpush1.bf16.msra.mxu0 %v4514_v33  ;;  %v4519_v43 = vpack.c.bf16 %v1564_v37, %v1561_v36 }
 0x759   :  { %3877 = vmatprep.subr.bf16.mxu0 %v4506_v42 }
 0x75a   :  { %3872 = vmatpush3.bf16.msra.mxu1 %v4519_v43 }
 0x75b   :  { %3336 = vmatmul.mubr.msk.f32.gmra.mrb[30].mxu0 %vm72_vm1, %v4463_v20  ;;  %3873 = vmatprep.subr.bf16.mxu1 %v4215_v1 }
 0x75c   :  { %1699 = vmatprep.mubr.f32.mxu0 %v4214_v0 }
 0x75e   :  { %3875 = vmatpush3.bf16.msra.mxu1 %v4522_v47 }
 0x75f   :  { %3884 = vmatprep.subr.bf16.mxu1 %v4215_v1 }
 0x80e   :  { %v1448_v27 = vpop.f32.mrb[16].mxu0  ;;  %v1519_v48 = vpop.f32.mrb[16].mxu1 }
 0x80f   :  { %v1523_v28 = vadd.f32 %v1448_v27, %v4315_v50  ;;  %v1450_v35 = vpop.f32.mrb[17].mxu0  ;;  %v3591_v49 = vpop.f32.mrb[17].mxu1  ;;  %v1537_v61 = vadd.f32 %v1519_v48, %v4325_v2  ;;  %v3329_v2 = vld [vmem:[%s4751_s2 + $0x2] ss:$8 sm:$0x7] }
 0x810   :  { %v1530_v52 = vadd.f32 %v1450_v35, %v4318_v54  ;;  %v4569_v14 = vrot.slane %v3329_v2, %v59_v41  ;;  %v4575_v17 = vrot.slane %v3329_v2, %v63_v45  ;;  %v4582_v45 = vld [vmem:[%s4751_s2 + $0x3] ss:$0 sm:$0xff]  ;;  %v4586_v25 = vrot.slane %v3329_v2, %v67_v62 }
 0x811   :  { %v3327_v51 = vmul.f32 -1.442695, %v1523_v28 }
 0x812   :  { %v3328_v53 = vmul.f32 -1.442695, %v1530_v52 }
 0x813   :  { %4097 = vpow2.f32 %v3327_v51 }
 0x814   :  { %4099 = vpow2.f32 %v3328_v53 }
 0x816   :  { %v4529_v55 = vpop.f32.mrb[18].mxu1 }
 0x817   :  { %v4531_v34 = vpop.f32.mrb[19].mxu1 }
 0x818   :  { %v1773_v32 = vadd.f32 %v4531_v34, %v4586_v25 }
 0x81a   :  { %v4533_v38 = vpop.f32.mrb[20].mxu1 }
 0x81b   :  { %v4535_v56 = vpop.f32.mrb[21].mxu1 }
 0x81d   :  { %v4098_v57 = vpop.eup %4097 }
 0x81e   :  { %v1527_v58 = vadd.f32 1.0, %v4098_v57  ;;  %v4537_v59 = vpop.f32.mrb[22].mxu1  ;;  %v4100_v60 = vpop.eup %4099 }
 0x81f   :  { %v4539_v50 = vpop.f32.mrb[23].mxu1  ;;  %v1534_v54 = vadd.f32 1.0, %v4100_v60 }
 0x820   :  { %4101 = vrcp.f32 %v1527_v58 }
 0x821   :  { %4103 = vrcp.f32 %v1534_v54 }
 0x82a   :  { %v4102_v63 = vpop.eup %4101 }
 0x82b   :  { %v1538_v3 = vmul.f32 %v4102_v63, %v1537_v61  ;;  %v4104_v5 = vpop.eup %4103 }
 0x82c   :  { %v1541_v6 = vsub.f32 1.0, %v4104_v5  ;;  %v1543_v12 = vmul.f32 %v4104_v5, %v4463_v20 }
 0x82d   :  { %v1539_v4 = vadd.f32 %v1538_v3, %v4330_v7 }
 0x82f   :  { %4105 = vtanh.f32 %v1539_v4  ;;  %v1778_v4 = vadd.f32 %v4529_v55, %v4586_v25 }
 0x839   :  { %v4106_v8 = vpop.eup %4105 }
 0x83a   :  { %v1542_v10 = vmul.f32 %v4106_v8, %v1541_v6 }
 0x83c   :  { %v1544_v13 = vadd.f32 %v1543_v12, %v1542_v10 }
 0x83e   :  { %3337 = vmatmul.mubr.msk.f32.gmra.mrb[32].mxu0 %vm72_vm1, %v1544_v13  ;;  %3610 = vmatmul.mubr.msk.f32.gmra.mrb[24].mxu1 %vm72_vm1, %v1544_v13 }
 0x83f   :  { %1875 = vmatprep.mubr.f32.mxu0 %v4214_v0  ;;  %3620 = vmatprep.mubr.msk.f32.mxu1 %vm4216_vm0, %v4214_v0 }
 0x842   :  { %1876 = vmatmul.mubr.f32.vlgmr.msra.gmra.mrb[18].mxu0 %v4214_v0  ;;  %3621 = vmatmul.mubr.f32.vlgmr.msra.gmra.mrb[26].mxu1 %v4214_v0 }
 0x843   :  { %3879 = vmatpush1.bf16.msra.mxu0 %v4508_v29  ;;  %3886 = vmatpush3.bf16.msra.mxu1 %v4519_v43 }
 0x844   :  { %3881 = vmatprep.subr.bf16.mxu0 %v4510_v30  ;;  %3887 = vmatprep.subr.bf16.mxu1 %v4215_v1 }
 0x845   :  { %2041 = vmatprep.mubr.f32.mxu0 %v4214_v0  ;;  %3631 = vmatprep.mubr.msk.f32.mxu1 %vm4216_vm0, %v4214_v0 }
 0x847   :  { %3883 = vmatpush1.bf16.msra.mxu0 %v4514_v33  ;;  %3889 = vmatpush3.bf16.msra.mxu1 %v4522_v47 }
 0x848   :  { %3891 = vmatprep.subr.bf16.mxu0 %v4506_v42  ;;  %3898 = vmatprep.subr.bf16.mxu1 %v4215_v1 }
 0x911   :  { %v4565_v7 = vpop.f32.mrb[24].mxu1 }
 0x912   :  { %v4571_v16 = vpop.f32.mrb[25].mxu1 }
 0x915   :  { %v1877_v19 = vpop.f32.mrb[18].mxu0  ;;  %v1948_v20 = vpop.f32.mrb[26].mxu1 }
 0x916   :  { %v3982_v21 = vadd.f32 %v1877_v19, %v4569_v14  ;;  %v1879_v22 = vpop.f32.mrb[19].mxu0  ;;  %v3622_v23 = vpop.f32.mrb[27].mxu1  ;;  %v1966_v9 = vadd.f32 %v1948_v20, %v4582_v45 }
 0x917   :  { %v3983_v18 = vadd.f32 %v1879_v22, %v4575_v17 }
 0x918   :  { %v3346_v24 = vmul.f32 -1.442695, %v3982_v21 }
 0x919   :  { %v3347_v15 = vmul.f32 -1.442695, %v3983_v18 }
 0x91a   :  { %4107 = vpow2.f32 %v3346_v24 }
 0x91b   :  { %4109 = vpow2.f32 %v3347_v15 }
 0x924   :  { %v4108_v41 = vpop.eup %4107 }
 0x925   :  { %v1956_v46 = vadd.f32 1.0, %v4108_v41  ;;  %v4110_v11 = vpop.eup %4109 }
 0x926   :  { %v1963_v26 = vadd.f32 1.0, %v4110_v11 }
 0x927   :  { %4111 = vrcp.f32 %v1956_v46 }
 0x928   :  { %4113 = vrcp.f32 %v1963_v26 }
 0x931   :  { %v4112_v31 = vpop.eup %4111 }
 0x932   :  { %v1967_v36 = vmul.f32 %v4112_v31, %v1966_v9  ;;  %v4114_v39 = vpop.eup %4113 }
 0x933   :  { %v1970_v44 = vsub.f32 1.0, %v4114_v39  ;;  %v1972_v28 = vmul.f32 0.0, %v4114_v39 }
 0x934   :  { %v1968_v37 = vadd.f32 %v1967_v36, %v1773_v32  ;;  %v1783_v32 = vadd.f32 %v4535_v56, %v4586_v25 }
 0x936   :  { %4115 = vtanh.f32 %v1968_v37 }
 0x940   :  { %v4116_v27 = vpop.eup %4115 }
 0x941   :  { %v1971_v48 = vmul.f32 %v4116_v27, %v1970_v44 }
 0x943   :  { %v4591_v35 = vadd.f32 %v1972_v28, %v1971_v48 }
 0x945   :  { %3348 = vmatmul.mubr.msk.f32.vlgmr.msra.gmra.mrb[20].mxu0 %vm72_vm1, %v4591_v35  ;;  %3632 = vmatmul.mubr.msk.f32.vlgmr.msra.gmra.mrb[28].mxu1 %vm72_vm1, %v4591_v35 }
 0x946   :  { %3893 = vmatpush1.bf16.msra.mxu0 %v4508_v29  ;;  %3900 = vmatpush3.bf16.msra.mxu1 %v4519_v43 }
 0x947   :  { %3895 = vmatprep.subr.bf16.mxu0 %v4510_v30  ;;  %3901 = vmatprep.subr.bf16.mxu1 %v4215_v1 }
 0x948   :  { %2207 = vmatprep.mubr.f32.mxu0 %v4214_v0  ;;  %3642 = vmatprep.mubr.msk.f32.mxu1 %vm4216_vm0, %v4214_v0 }
 0x94a   :  { %3897 = vmatpush1.bf16.msra.mxu0 %v4514_v33  ;;  %3903 = vmatpush3.bf16.msra.mxu1 %v4522_v47 }
 0x94b   :  { %3905 = vmatprep.subr.bf16.mxu0 %v4506_v42  ;;  %3912 = vmatprep.subr.bf16.mxu1 %v4215_v1 }
 0xa18   :  { %v2043_v40 = vpop.f32.mrb[20].mxu0  ;;  %v2114_v62 = vpop.f32.mrb[28].mxu1 }
 0xa19   :  { %v3984_v49 = vadd.f32 %v2043_v40, %v4569_v14  ;;  %v2045_v51 = vpop.f32.mrb[21].mxu0  ;;  %v3633_v52 = vpop.f32.mrb[29].mxu1  ;;  %v2132_v63 = vadd.f32 %v2114_v62, %v4582_v45 }
 0xa1a   :  { %v3985_v34 = vadd.f32 %v2045_v51, %v4575_v17 }
 0xa1b   :  { %v3350_v53 = vmul.f32 -1.442695, %v3984_v49 }
 0xa1c   :  { %v3351_v57 = vmul.f32 -1.442695, %v3985_v34 }
 0xa1d   :  { %4117 = vpow2.f32 %v3350_v53 }
 0xa1e   :  { %4119 = vpow2.f32 %v3351_v57 }
 0xa27   :  { %v4118_v58 = vpop.eup %4117 }
 0xa28   :  { %v2122_v60 = vadd.f32 1.0, %v4118_v58  ;;  %v4120_v54 = vpop.eup %4119 }
 0xa29   :  { %v2129_v61 = vadd.f32 1.0, %v4120_v54 }
 0xa2a   :  { %4121 = vrcp.f32 %v2122_v60 }
 0xa2b   :  { %4123 = vrcp.f32 %v2129_v61 }
 0xa34   :  { %v4122_v3 = vpop.eup %4121 }
 0xa35   :  { %v2133_v5 = vmul.f32 %v4122_v3, %v2132_v63  ;;  %v4124_v8 = vpop.eup %4123 }
 0xa36   :  { %v2136_v10 = vsub.f32 1.0, %v4124_v8  ;;  %v2138_v2 = vmul.f32 %v4124_v8, %v4591_v35 }
 0xa37   :  { %v2134_v6 = vadd.f32 %v2133_v5, %v1778_v4  ;;  %v1788_v4 = vadd.f32 %v4533_v38, %v4586_v25 }
 0xa39   :  { %4125 = vtanh.f32 %v2134_v6 }
 0xa43   :  { %v4126_v12 = vpop.eup %4125 }
 0xa44   :  { %v2137_v13 = vmul.f32 %v4126_v12, %v2136_v10 }
 0xa46   :  { %v4614_v19 = vadd.f32 %v2138_v2, %v2137_v13 }
 0xa48   :  { %3352 = vmatmul.mubr.msk.f32.vlgmr.msra.gmra.mrb[22].mxu0 %vm72_vm1, %v4614_v19  ;;  %3643 = vmatmul.mubr.msk.f32.vlgmr.msra.gmra.mrb[30].mxu1 %vm72_vm1, %v4614_v19 }
 0xa49   :  { %3907 = vmatpush1.bf16.msra.mxu0 %v4508_v29  ;;  %3914 = vmatpush3.bf16.msra.mxu1 %v4519_v43 }
 0xa4a   :  { %3909 = vmatprep.subr.bf16.mxu0 %v4510_v30  ;;  %3915 = vmatprep.subr.bf16.mxu1 %v4215_v1 }
 0xa4b   :  { %2373 = vmatprep.mubr.f32.mxu0 %v4214_v0  ;;  %3653 = vmatprep.mubr.msk.f32.mxu1 %vm4216_vm0, %v4214_v0 }
 0xa4d   :  { %3911 = vmatpush1.bf16.msra.mxu0 %v4514_v33  ;;  %3917 = vmatpush3.bf16.msra.mxu1 %v4522_v47 }
 0xa4e   :  { %3919 = vmatprep.subr.bf16.mxu0 %v4506_v42  ;;  %3926 = vmatprep.subr.bf16.mxu1 %v4215_v1 }
 0xb1b   :  { %v2209_v55 = vpop.f32.mrb[22].mxu0  ;;  %v2280_v20 = vpop.f32.mrb[30].mxu1 }
 0xb1c   :  { %v3986_v21 = vadd.f32 %v2209_v55, %v4569_v14  ;;  %v2211_v22 = vpop.f32.mrb[23].mxu0  ;;  %v3644_v23 = vpop.f32.mrb[31].mxu1  ;;  %v2298_v9 = vadd.f32 %v2280_v20, %v4582_v45 }
 0xb1d   :  { %v3987_v18 = vadd.f32 %v2211_v22, %v4575_v17 }
 0xb1e   :  { %v3354_v24 = vmul.f32 -1.442695, %v3986_v21 }
 0xb1f   :  { %v3355_v15 = vmul.f32 -1.442695, %v3987_v18 }
 0xb20   :  { %4127 = vpow2.f32 %v3354_v24 }
 0xb21   :  { %4129 = vpow2.f32 %v3355_v15 }
 0xb2a   :  { %v4128_v41 = vpop.eup %4127 }
 0xb2b   :  { %v2288_v46 = vadd.f32 1.0, %v4128_v41  ;;  %v4130_v11 = vpop.eup %4129 }
 0xb2c   :  { %v2295_v26 = vadd.f32 1.0, %v4130_v11 }
 0xb2d   :  { %4131 = vrcp.f32 %v2288_v46 }
 0xb2e   :  { %4133 = vrcp.f32 %v2295_v26 }
 0xb37   :  { %v4132_v31 = vpop.eup %4131 }
 0xb38   :  { %v2299_v36 = vmul.f32 %v4132_v31, %v2298_v9  ;;  %v4134_v39 = vpop.eup %4133 }
 0xb39   :  { %v2302_v44 = vsub.f32 1.0, %v4134_v39  ;;  %v2304_v28 = vmul.f32 %v4134_v39, %v4614_v19 }
 0xb3a   :  { %v2300_v37 = vadd.f32 %v2299_v36, %v1783_v32  ;;  %v1793_v32 = vadd.f32 %v4539_v50, %v4586_v25 }
 0xb3c   :  { %4135 = vtanh.f32 %v2300_v37 }
 0xb46   :  { %v4136_v27 = vpop.eup %4135 }
 0xb47   :  { %v2303_v48 = vmul.f32 %v4136_v27, %v2302_v44 }
 0xb49   :  { %v4637_v40 = vadd.f32 %v2304_v28, %v2303_v48 }
 0xb4b   :  { %3356 = vmatmul.mubr.msk.f32.vlgmr.msra.gmra.mrb[24].mxu0 %vm72_vm1, %v4637_v40  ;;  %3654 = vmatmul.mubr.msk.f32.vlgmr.msra.gmra.mrb[32].mxu1 %vm72_vm1, %v4637_v40 }
 0xb4c   :  { %3921 = vmatpush1.bf16.msra.mxu0 %v4508_v29  ;;  %3928 = vmatpush3.bf16.msra.mxu1 %v4519_v43 }
 0xb4d   :  { %3923 = vmatprep.subr.bf16.mxu0 %v4510_v30  ;;  %3929 = vmatprep.subr.bf16.mxu1 %v4215_v1 }
 0xb4e   :  { %2539 = vmatprep.mubr.f32.mxu0 %v4214_v0  ;;  %3664 = vmatprep.mubr.msk.f32.mxu1 %vm4216_vm0, %v4214_v0 }
 0xb50   :  { %3925 = vmatpush1.bf16.msra.mxu0 %v4514_v33  ;;  %3931 = vmatpush3.bf16.msra.mxu1 %v4522_v47 }
 0xb51   :  { %3933 = vmatprep.subr.bf16.mxu0 %v4506_v42  ;;  %3940 = vmatprep.subr.bf16.mxu1 %v4215_v1 }
 0xc1e   :  { %v2375_v56 = vpop.f32.mrb[24].mxu0  ;;  %v2446_v62 = vpop.f32.mrb[32].mxu1 }
 0xc1f   :  { %v3988_v49 = vadd.f32 %v2375_v56, %v4569_v14  ;;  %v2377_v51 = vpop.f32.mrb[25].mxu0  ;;  %v3655_v52 = vpop.f32.mrb[33].mxu1  ;;  %v2464_v63 = vadd.f32 %v2446_v62, %v4582_v45 }
 0xc20   :  { %v3989_v34 = vadd.f32 %v2377_v51, %v4575_v17 }
 0xc21   :  { %v3358_v53 = vmul.f32 -1.442695, %v3988_v49 }
 0xc22   :  { %v3359_v57 = vmul.f32 -1.442695, %v3989_v34 }
 0xc23   :  { %4137 = vpow2.f32 %v3358_v53 }
 0xc24   :  { %4139 = vpow2.f32 %v3359_v57 }
 0xc2d   :  { %v4138_v58 = vpop.eup %4137 }
 0xc2e   :  { %v2454_v60 = vadd.f32 1.0, %v4138_v58  ;;  %v4140_v54 = vpop.eup %4139 }
 0xc2f   :  { %v2461_v61 = vadd.f32 1.0, %v4140_v54 }
 0xc30   :  { %4141 = vrcp.f32 %v2454_v60 }
 0xc31   :  { %4143 = vrcp.f32 %v2461_v61 }
 0xc3a   :  { %v4142_v3 = vpop.eup %4141 }
 0xc3b   :  { %v2465_v5 = vmul.f32 %v4142_v3, %v2464_v63  ;;  %v4144_v8 = vpop.eup %4143  ;;  %v1798_v3 = vadd.f32 %v4537_v59, %v4586_v25  ;;  %v3137_v59 = vld [vmem:[#allocation2 + $0x180] sm:$0xff] }
 0xc3c   :  { %v2468_v10 = vsub.f32 1.0, %v4144_v8  ;;  %v2470_v2 = vmul.f32 %v4144_v8, %v4637_v40 }
 0xc3d   :  { %v2466_v6 = vadd.f32 %v2465_v5, %v1788_v4 }
 0xc3f   :  { %4145 = vtanh.f32 %v2466_v6 }
 0xc49   :  { %v4146_v12 = vpop.eup %4145 }
 0xc4a   :  { %v2469_v13 = vmul.f32 %v4146_v12, %v2468_v10 }
 0xc4c   :  { %v4660_v55 = vadd.f32 %v2470_v2, %v2469_v13 }
 0xc4e   :  { %3360 = vmatmul.mubr.msk.f32.vlgmr.msra.gmra.mrb[26].mxu0 %vm72_vm1, %v4660_v55  ;;  %3665 = vmatmul.mubr.msk.f32.vlgmr.msra.gmra.mrb[34].mxu1 %vm72_vm1, %v4660_v55 }
 0xc4f   :  { %3935 = vmatpush1.bf16.msra.mxu0 %v4508_v29  ;;  %3942 = vmatpush3.bf16.msra.mxu1 %v4519_v43 }
 0xc50   :  { %3937 = vmatprep.subr.bf16.mxu0 %v4510_v30  ;;  %3943 = vmatprep.subr.bf16.mxu1 %v4215_v1 }
 0xc51   :  { %2705 = vmatprep.mubr.f32.mxu0 %v4214_v0  ;;  %3675 = vmatprep.mubr.msk.f32.mxu1 %vm4216_vm0, %v4214_v0 }
 0xc53   :  { %3939 = vmatpush1.bf16.msra.mxu0 %v4514_v33  ;;  %3945 = vmatpush3.bf16.msra.mxu1 %v4522_v47 }
 0xc54   :  { %3947 = vmatprep.subr.bf16.mxu0 %v4506_v42  ;;  %3954 = vmatprep.subr.bf16.mxu1 %v4215_v1 }
 0xd21   :  { %v2541_v38 = vpop.f32.mrb[26].mxu0  ;;  %v2612_v20 = vpop.f32.mrb[34].mxu1 }
 0xd22   :  { %v3990_v21 = vadd.f32 %v2541_v38, %v4569_v14  ;;  %v2543_v22 = vpop.f32.mrb[27].mxu0  ;;  %v3666_v23 = vpop.f32.mrb[35].mxu1  ;;  %v2630_v9 = vadd.f32 %v2612_v20, %v4582_v45  ;;  %v3138_v38 = vld [vmem:[#allocation2 + $0x198] sm:$0xff] }
 0xd23   :  { %v3991_v18 = vadd.f32 %v2543_v22, %v4575_v17  ;;  %v3974_v20 = vpack.c.bf16 %v3138_v38, %v3137_v59 }
 0xd24   :  { %v3362_v24 = vmul.f32 -1.442695, %v3990_v21 }
 0xd25   :  { %v3363_v15 = vmul.f32 -1.442695, %v3991_v18 }
 0xd26   :  { %4147 = vpow2.f32 %v3362_v24 }
 0xd27   :  { %4149 = vpow2.f32 %v3363_v15 }
 0xd30   :  { %v4148_v41 = vpop.eup %4147 }
 0xd31   :  { %v2620_v46 = vadd.f32 1.0, %v4148_v41  ;;  %v4150_v11 = vpop.eup %4149 }
 0xd32   :  { %v2627_v26 = vadd.f32 1.0, %v4150_v11 }
 0xd33   :  { %4151 = vrcp.f32 %v2620_v46  ;;  %v1803_v46 = vadd.f32 %v4571_v16, %v4586_v25 }
 0xd34   :  { %4153 = vrcp.f32 %v2627_v26 }
 0xd3d   :  { %v4152_v31 = vpop.eup %4151 }
 0xd3e   :  { %v2631_v36 = vmul.f32 %v4152_v31, %v2630_v9  ;;  %v4154_v39 = vpop.eup %4153 }
 0xd3f   :  { %v2634_v44 = vsub.f32 1.0, %v4154_v39  ;;  %v2636_v28 = vmul.f32 %v4154_v39, %v4660_v55 }
 0xd40   :  { %v2632_v37 = vadd.f32 %v2631_v36, %v1793_v32  ;;  %v3139_v36 = vld [vmem:[#allocation2 + $0x1b0] sm:$0xff] }
 0xd42   :  { %4155 = vtanh.f32 %v2632_v37  ;;  %v3140_v37 = vld [vmem:[#allocation2 + $0x1c8] sm:$0xff] }
 0xd4c   :  { %v4156_v27 = vpop.eup %4155 }
 0xd4d   :  { %v2635_v48 = vmul.f32 %v4156_v27, %v2634_v44 }
 0xd4f   :  { %v4683_v56 = vadd.f32 %v2636_v28, %v2635_v48  ;;  %v3978_v48 = vpack.c.bf16 %v3140_v37, %v3139_v36 }
 0xd51   :  { %3364 = vmatmul.mubr.msk.f32.vlgmr.msra.gmra.mrb[28].mxu0 %vm72_vm1, %v4683_v56  ;;  %3676 = vmatmul.mubr.msk.f32.vlgmr.msra.gmra.mrb[36].mxu1 %vm72_vm1, %v4683_v56 }
 0xd52   :  { %3949 = vmatpush1.bf16.msra.mxu0 %v4508_v29  ;;  %3956 = vmatpush3.bf16.msra.mxu1 %v4519_v43 }
 0xd53   :  { %3951 = vmatprep.subr.bf16.mxu0 %v4510_v30  ;;  %3957 = vmatprep.subr.bf16.mxu1 %v4215_v1 }
 0xd54   :  { %2871 = vmatprep.mubr.f32.mxu0 %v4214_v0  ;;  %3686 = vmatprep.mubr.msk.f32.mxu1 %vm4216_vm0, %v4214_v0 }
 0xd56   :  { %3953 = vmatpush1.bf16.msra.mxu0 %v4514_v33  ;;  %3959 = vmatpush3.bf16.msra.mxu1 %v4522_v47 }
 0xd57   :  { %3968 = vmatprep.subr.bf16.mxu1 %v4215_v1  ;;  %3961 = vmatprep.subr.bf16.mxu0 %v4506_v42 }
 0xe24   :  { %v2707_v50 = vpop.f32.mrb[28].mxu0  ;;  %v2778_v62 = vpop.f32.mrb[36].mxu1 }
 0xe25   :  { %v3992_v49 = vadd.f32 %v2707_v50, %v4569_v14  ;;  %v2709_v51 = vpop.f32.mrb[29].mxu0  ;;  %v3677_v52 = vpop.f32.mrb[37].mxu1  ;;  %v2796_v63 = vadd.f32 %v2778_v62, %v4582_v45 }
 0xe26   :  { %v3993_v34 = vadd.f32 %v2709_v51, %v4575_v17 }
 0xe27   :  { %v3366_v53 = vmul.f32 -1.442695, %v3992_v49 }
 0xe28   :  { %v3367_v57 = vmul.f32 -1.442695, %v3993_v34 }
 0xe29   :  { %4157 = vpow2.f32 %v3366_v53 }
 0xe2a   :  { %4159 = vpow2.f32 %v3367_v57 }
 0xe33   :  { %v4158_v58 = vpop.eup %4157 }
 0xe34   :  { %v2786_v60 = vadd.f32 1.0, %v4158_v58  ;;  %v4160_v54 = vpop.eup %4159 }
 0xe35   :  { %v2793_v61 = vadd.f32 1.0, %v4160_v54 }
 0xe36   :  { %4161 = vrcp.f32 %v2786_v60 }
 0xe37   :  { %4163 = vrcp.f32 %v2793_v61 }
 0xe40   :  { %v4162_v42 = vpop.eup %4161 }
 0xe41   :  { %v2797_v4 = vmul.f32 %v4162_v42, %v2796_v63  ;;  %v4164_v6 = vpop.eup %4163 }
 0xe42   :  { %v2800_v8 = vsub.f32 1.0, %v4164_v6  ;;  %v2802_v13 = vmul.f32 %v4164_v6, %v4683_v56  ;;  %v1808_v6 = vadd.f32 %v4565_v7, %v4586_v25 }
 0xe43   :  { %v2798_v5 = vadd.f32 %v2797_v4, %v1798_v3 }
 0xe45   :  { %4165 = vtanh.f32 %v2798_v5 }
 0xe4f   :  { %v4166_v10 = vpop.eup %4165 }
 0xe50   :  { %v2801_v12 = vmul.f32 %v4166_v10, %v2800_v8 }
 0xe52   :  { %v2803_v2 = vadd.f32 %v2802_v13, %v2801_v12 }
 0xe54   :  { %3368 = vmatmul.mubr.msk.f32.vlgmr.msra.gmra.mrb[30].mxu0 %vm72_vm1, %v2803_v2  ;;  %3687 = vmatmul.mubr.msk.f32.vlgmr.msra.gmra.mrb[38].mxu1 %vm72_vm1, %v2803_v2 }
 0xe55   :  { %3970 = vmatpush3.bf16.msra.mxu1 %v4519_v43  ;;  %3963 = vmatpush1.bf16.msra.mxu0 %v4508_v29 }
 0xe56   :  { %3971 = vmatprep.subr.bf16.mxu1 %v4215_v1  ;;  %3965 = vmatprep.subr.bf16.mxu0 %v4510_v30 }
 0xe57   :  { %3037 = vmatprep.mubr.f32.mxu0 %v4214_v0  ;;  %3697 = vmatprep.mubr.msk.f32.mxu1 %vm4216_vm0, %v4214_v0 }
 0xe59   :  { %3973 = vmatpush3.bf16.msra.mxu1 %v4522_v47  ;;  %3967 = vmatpush1.bf16.msra.mxu0 %v4514_v33 }
 0xe5a   :  { %3975 = vmatprep.subr.bf16.mxu1 %v3974_v20 }
 0xf27   :  { %v2873_v43 = vpop.f32.mrb[30].mxu0  ;;  %v2944_v21 = vpop.f32.mrb[38].mxu1 }
 0xf28   :  { %v3994_v29 = vadd.f32 %v2873_v43, %v4569_v14  ;;  %v2875_v1 = vpop.f32.mrb[31].mxu0  ;;  %v3688_v22 = vpop.f32.mrb[39].mxu1  ;;  %v2962_v15 = vadd.f32 %v2944_v21, %v4582_v45 }
 0xf29   :  { %v3995_v23 = vadd.f32 %v2875_v1, %v4575_v17 }
 0xf2a   :  { %v3370_v30 = vmul.f32 -1.442695, %v3994_v29 }
 0xf2b   :  { %v3371_v24 = vmul.f32 -1.442695, %v3995_v23 }
 0xf2c   :  { %4167 = vpow2.f32 %v3370_v30 }
 0xf2d   :  { %4169 = vpow2.f32 %v3371_v24 }
 0xf36   :  { %v4168_v0 = vpop.eup %4167 }
 0xf37   :  { %v2952_v47 = vadd.f32 1.0, %v4168_v0  ;;  %v4170_v33 = vpop.eup %4169 }
 0xf38   :  { %v2959_v18 = vadd.f32 1.0, %v4170_v33 }
 0xf39   :  { %4171 = vrcp.f32 %v2952_v47 }
 0xf3a   :  { %4173 = vrcp.f32 %v2959_v18 }
 0xf43   :  { %v4172_v41 = vpop.eup %4171 }
 0xf44   :  { %v2963_v11 = vmul.f32 %v4172_v41, %v2962_v15  ;;  %v4174_v9 = vpop.eup %4173 }
 0xf45   :  { %v2966_v31 = vsub.f32 1.0, %v4174_v9  ;;  %v2968_v44 = vmul.f32 %v4174_v9, %v2803_v2 }
 0xf46   :  { %v2964_v26 = vadd.f32 %v2963_v11, %v1803_v46 }
 0xf48   :  { %4175 = vtanh.f32 %v2964_v26 }
 0xf52   :  { %v4176_v32 = vpop.eup %4175 }
 0xf53   :  { %v2967_v39 = vmul.f32 %v4176_v32, %v2966_v31 }
 0xf55   :  { %v2969_v27 = vadd.f32 %v2968_v44, %v2967_v39 }
 0xf57   :  { %3372 = vmatmul.mubr.msk.f32.vlgmr.msra.gmra.mrb[32].mxu0 %vm72_vm1, %v2969_v27  ;;  %3698 = vmatmul.mubr.msk.f32.vlgmr.msra.gmra.mrb[40].mxu1 %vm72_vm1, %v2969_v27 }
 0xf58   :  { %3977 = vmatpush3.bf16.msra.mxu1 %v3974_v20  ;;  %3708 = vmatprep.mubr.msk.f32.mxu1 %vm72_vm1, %v4591_v35 }
 0xf59   :  { %3979 = vmatprep.subr.bf16.mxu1 %v3978_v48 }
 0xf5c   :  { %3981 = vmatpush3.bf16.msra.mxu1 %v3978_v48 }
 0xf5f   :  { %3709 = vmatmul.mubr.msk.f32.vlgmr.msra.gmra.mrb[42].mxu1 %vm72_vm1, %v4614_v19 }
 0xf60   :  { %3711 = vmatprep.mubr.msk.f32.mxu1 %vm72_vm1, %v4637_v40  ;;  %v3141_v40 = vld [vmem:[%s4751_s2 + $0x4] ss:$0 sm:$0xff]  ;;  %s4220_s2 = smov 64  }
 0xf63   :  { %3712 = vmatmul.mubr.msk.f32.gmra.mrb[44].mxu1 %vm72_vm1, %v4660_v55 }
 0xf64   :  { %3714 = vmatprep.mubr.msk.f32.mxu1 %vm72_vm1, %v4683_v56 }
 0xf67   :  { %3715 = vmatmul.mubr.msk.f32.gmra.mrb[46].mxu1 %vm72_vm1, %v2803_v2 }
 0xf68   :  { %3717 = vmatprep.mubr.msk.f32.mxu1 %vm72_vm1, %v2969_v27 }
0x102a   :  { %v3039_v16 = vpop.f32.mrb[32].mxu0  ;;  %v3110_v35 = vpop.f32.mrb[40].mxu1 }
0x102b   :  { %v3996_v28 = vadd.f32 %v3039_v16, %v4569_v14  ;;  %v3041_v50 = vpop.f32.mrb[33].mxu0  ;;  %v3699_v62 = vpop.f32.mrb[41].mxu1  ;;  %v3128_v4 = vadd.f32 %v3110_v35, %v4582_v45 }
0x102c   :  { %v3997_v49 = vadd.f32 %v3041_v50, %v4575_v17 }
0x102d   :  { %v3374_v19 = vmul.f32 -1.442695, %v3996_v28 }
0x102e   :  { %v3375_v55 = vmul.f32 -1.442695, %v3997_v49 }
0x102f   :  { %4177 = vpow2.f32 %v3374_v19 }
0x1030   :  { %4179 = vpow2.f32 %v3375_v55 }
0x1032   :  { %v3710_v56 = vpop.f32.mrb[42].mxu1 }
0x1033   :  { %v3217_v51 = vadd.f32 %v3710_v56, %v3141_v40  ;;  %v3211_v52 = vpop.f32.mrb[43].mxu1 }
0x1034   :  { %v3212_v1 = vadd.f32 %v3211_v52, %v3141_v40 }
0x1035   :  { %3251 = vrot.lane.b32.xlu0 %v3217_v51, %s4217_s9 }
0x1036   :  { %v3713_v53 = vpop.f32.mrb[44].mxu1 }
0x1037   :  { %v3227_v34 = vadd.f32 %v3713_v53, %v3141_v40  ;;  %v3221_v14 = vpop.f32.mrb[45].mxu1 }
0x1038   :  { %v3222_v57 = vadd.f32 %v3221_v14, %v3141_v40 }
0x1039   :  { %v4178_v58 = vpop.eup %4177  ;;  %3259 = vrot.lane.b32.xlu1 %v3227_v34, %s4218_s10 }
0x103a   :  { %v3118_v17 = vadd.f32 1.0, %v4178_v58  ;;  %v3716_v60 = vpop.f32.mrb[46].mxu1  ;;  %3255 = vrot.lane.b32.xlu0 %v3222_v57, %s4219_s11  ;;  %v4180_v42 = vpop.eup %4179 }
0x103b   :  { %v3237_v54 = vadd.f32 %v3716_v60, %v3141_v40  ;;  %v3231_v61 = vpop.f32.mrb[47].mxu1  ;;  %v3125_v3 = vadd.f32 1.0, %v4180_v42 }
0x103c   :  { %4181 = vrcp.f32 %v3118_v17  ;;  %v3232_v63 = vadd.f32 %v3231_v61, %v3141_v40 }
0x103d   :  { %4183 = vrcp.f32 %v3125_v3 }
0x103e   :  { %3263 = vrot.lane.b32.xlu1 %v3232_v63, %s4220_s2  ;;  %3267 = vrot.lane.b32.xlu0 %v3237_v54, %s4221_s12 }
0x1046   :  { %v4182_v5 = vpop.eup %4181 }
0x1047   :  { %v3129_v8 = vmul.f32 %v4182_v5, %v3128_v4  ;;  %v4184_v12 = vpop.eup %4183 }
0x1048   :  { %v3132_v13 = vsub.f32 1.0, %v4184_v12  ;;  %v3134_v38 = vmul.f32 %v4184_v12, %v2969_v27 }
0x1049   :  { %v3130_v10 = vadd.f32 %v3129_v8, %v1808_v6 }
0x104b   :  { %4185 = vtanh.f32 %v3130_v10 }
0x1055   :  { %v4186_v2 = vpop.eup %4185 }
0x1056   :  { %v3133_v59 = vmul.f32 %v4186_v2, %v3132_v13 }
0x1058   :  { %v3135_v20 = vadd.f32 %v3134_v38, %v3133_v59 }
0x105a   :  { %3718 = vmatmul.mubr.msk.f32.gmra.mrb[48].mxu1 %vm72_vm1, %v3135_v20 }
0x10a7   :  { %v3252_v7 = vpop.permute.xlu0 %3251 }
0x10a8   :  { %v3279_v30 = vsel %vm3278_vm2, %v3212_v1, %v3252_v7 }
0x10ab   :  { %v3260_v25 = vpop.permute.xlu1 %3259 }
0x10ac   :  { %v3256_v22 = vpop.permute.xlu0 %3255 }
0x10ad   :  { %v3280_v23 = vsel %vm72_vm1, %v3279_v30, %v3256_v22 }
0x10ae   :  { %v3282_v0 = vsel %vm3281_vm3, %v3280_v23, %v3260_v25 }
0x10b0   :  { %v3264_v24 = vpop.permute.xlu1 %3263  ;;  %v3268_v33 = vpop.permute.xlu0 %3267 }
0x10b1   :  { %v3284_v47 = vsel %vm3283_vm4, %v3282_v0, %v3264_v24 }
0x10b2   :  { %v3286_v18 = vsel %vm3285_vm5, %v3284_v47, %v3268_v33 }
0x112d   :  { %v3719_v43 = vpop.f32.mrb[48].mxu1 }
0x112e   :  { %v3247_v21 = vadd.f32 %v3719_v43, %v3141_v40  ;;  %v3241_v29 = vpop.f32.mrb[49].mxu1 }
0x112f   :  { %v3242_v45 = vadd.f32 %v3241_v29, %v3141_v40 }
0x1130   :  { %3275 = vrot.lane.b32.xlu0 %v3247_v21, %s4222_s13 }
0x1131   :  { %3271 = vrot.lane.b32.xlu1 %v3242_v45, %s4223_s14 }
0x11a2   :  { %v3276_v41 = vpop.permute.xlu0 %3275 }
0x11a3   :  { %v3272_v15 = vpop.permute.xlu1 %3271 }
0x11a4   :  { %v3288_v46 = vsel %vm3287_vm6, %v3286_v18, %v3272_v15 }
0x11a5   :  { %v3290_v11 = vsel %vm3289_vm7, %v3288_v46, %v3276_v41 }
0x11a6   :  { %3291 = vst [vmem:[%s4752_s3] sm:$0xff] %v3290_v11 }
0x11a7   :  { %3296 = vsyncpa [#allocation3], 1 }

</bundles_post_ra>
